<compile_context>
chip_gen: v6e
topology: v6e:2x2x1
jax: 0.10.0
libtpu: 0.0.40
codegen_flags: <defaults>
</compile_context>

<pallas_src>
import functools
import math

import numpy as np

import jax
import jax.numpy as jnp
from jax import lax
from jax.experimental import pallas as pl
from jax.experimental.pallas import tpu as pltpu

# ------------------------- model hyper-parameters --------------------------
SCALING_FACTOR = 0.18215      # vae.config.scaling_factor (SD default)
VOCAB = 64                    # synthetic tokenizer vocab
SEQ = 8                       # tokenizer max length (synthetic)
HIDDEN = 32                   # text-encoder hidden size (synthetic)
UCH = 32                      # unet feature channels (synthetic)
LATENT_C = 4                  # SD latent channels
PATCH = 4                     # VAE spatial down/up factor (synthetic; SD is 8)
ENC_CH = 32                   # VAE encoder channels (synthetic)
DEC_CH = 32                   # VAE decoder channels (synthetic)
IMG_C = 3
ROW_TILE = 16                 # M tile for the row-parallel VAE kernels


# ---------------------------------------------------------------------------
# In-kernel helpers
# ---------------------------------------------------------------------------
def _mm(x, w_ref, b_ref):
    """MXU matmul: bf16 inputs, f32 accumulation, f32 bias add."""
    y = jnp.dot(x.astype(jnp.bfloat16), w_ref[...],
                preferred_element_type=jnp.float32)
    return y + b_ref[...]


def _silu(x):
    # activation math stays f32 (v5e VPU/EUP have no bf16).
    return x * jax.nn.sigmoid(x)


# ---------------------------------------------------------------------------
# Pallas kernels
# ---------------------------------------------------------------------------
def _text_proj_kernel(x_ref, w_ref, b_ref, o_ref):
    """Stand-in for CLIPTextModel: single projection over embedded tokens."""
    o_ref[...] = _mm(x_ref[...], w_ref, b_ref)


def _vae_encode_kernel(x_ref, eps_ref, w1, b1, w2, b2, wm, bm, wv, bv,
                       lat_ref):
    """Fused VAE encoder: conv stack + latent_dist.sample() + *scale."""
    h = _silu(_mm(x_ref[...], w1, b1))
    h = _silu(_mm(h, w2, b2))
    mean = _mm(h, wm, bm)
    logvar = jnp.clip(_mm(h, wv, bv), -30.0, 20.0)
    z = mean + jnp.exp(0.5 * logvar) * eps_ref[...]      # reparameterize
    lat_ref[...] = z * SCALING_FACTOR                    # * scaling_factor


def _unet_ddpm_kernel(lat_ref, temb_ref, ehs_ref,
                      w_in, b_in, w_te, b_te, w_q, b_q, w_kv, b_kv,
                      w_o, b_o, w_out, b_out, xden_ref, *,
                      batch, hw, seq, uch,
                      sqrt_beta, inv_sqrt_alpha, coeff_orig, coeff_sample):
    """Fused UNet body + cross-attention + DDPM step (t=999)."""
    sample = lat_ref[...]                                # (B*HW, LATENT_C) f32

    # conv_in (1x1 stand-in) + timestep-embedding MLP.
    # TODO(synk): real UNet conv_in is 3x3; 1x1 synthetic stand-in here.
    h = _mm(sample, w_in, b_in)                          # (B*HW, UCH)
    temb = _silu(_mm(temb_ref[...], w_te, b_te))         # (1, UCH)
    h = h + temb

    # Cross-attention: q from spatial tokens (1/sqrt(d) pre-folded into
    # w_q/b_q), fused k|v projection straight from bf16 prompt embeddings.
    q = _mm(h, w_q, b_q)                                 # (B*HW, UCH)
    kv = _mm(ehs_ref[...], w_kv, b_kv)                   # (B*SEQ, 2*UCH) f32

    attn_rows = []
    for bi in range(batch):                              # static unroll, tiny B
        qb = q[bi * hw:(bi + 1) * hw, :]                 # (HW, UCH)
        kvb = kv[bi * seq:(bi + 1) * seq, :]             # (SEQ, 2*UCH)
        kb = kvb[:, :uch].astype(jnp.bfloat16)
        vb = kvb[:, uch:].astype(jnp.bfloat16)
        s = lax.dot_general(qb.astype(jnp.bfloat16), kb,
                            (((1,), (1,)), ((), ())),
                            preferred_element_type=jnp.float32)  # (HW, SEQ)
        s = s - jnp.max(s, axis=-1, keepdims=True)
        p = jnp.exp(s)
        p = p * pl.reciprocal(jnp.sum(p, axis=-1, keepdims=True), approx=True)
        attn_rows.append(jnp.dot(p.astype(jnp.bfloat16), vb,
                                 preferred_element_type=jnp.float32))
    attn = jnp.concatenate(attn_rows, axis=0)            # (B*HW, UCH)
    h = h + _mm(attn, w_o, b_o)                          # o-proj + residual

    # conv_out (1x1 stand-in) -> epsilon prediction, fused DDPM step.
    eps_pred = _mm(h, w_out, b_out)                      # (B*HW, LATENT_C)
    pred_original = (sample - sqrt_beta * eps_pred) * inv_sqrt_alpha
    # TODO(synk): DDPM variance noise omitted (exactly 0 here: prev_t=-1).
    xden_ref[...] = coeff_orig * pred_original + coeff_sample * sample


def _vae_decode_kernel(z_ref, w1, b1, w2, b2, w3, b3, img_ref):
    """Fused VAE decoder; w1 is pre-scaled by 1/scaling_factor; clamp fused."""
    h = _silu(_mm(z_ref[...], w1, b1))
    h = _silu(_mm(h, w2, b2))
    img_ref[...] = jnp.clip(_mm(h, w3, b3), -1.0, 1.0)   # .clamp(-1, 1)


# ---------------------------------------------------------------------------
# pallas_call wrappers
# ---------------------------------------------------------------------------
def _rows(tm, n):
    return pl.BlockSpec((tm, n), lambda i: (i, 0))


def _whole(arr):
    return pl.BlockSpec(arr.shape, lambda i: (0,) * arr.ndim)


def text_project(params, x):
    M, _ = x.shape
    return pl.pallas_call(
        _text_proj_kernel,
        out_shape=jax.ShapeDtypeStruct((M, HIDDEN), jnp.float32),
    )(x, params["txt_proj_w"], params["txt_proj_b"])


def vae_encode_sample(params, x_cols, eps):
    M, Kin = x_cols.shape
    assert M % ROW_TILE == 0
    weights = (params["enc_w1"], params["enc_b1"], params["enc_w2"],
               params["enc_b2"], params["enc_wm"], params["enc_bm"],
               params["enc_wv"], params["enc_bv"])
    return pl.pallas_call(
        _vae_encode_kernel,
        out_shape=jax.ShapeDtypeStruct((M, LATENT_C), jnp.float32),
        grid=(M // ROW_TILE,),
        in_specs=[_rows(ROW_TILE, Kin), _rows(ROW_TILE, LATENT_C)]
                 + [_whole(w) for w in weights],
        out_specs=_rows(ROW_TILE, LATENT_C),
        compiler_params=pltpu.CompilerParams(
            dimension_semantics=("parallel",)),
    )(x_cols, eps, *weights)


def unet_ddpm_step(params, lat, ehs_bf16):
    M = lat.shape[0]
    batch = ehs_bf16.shape[0] // SEQ
    hw = M // batch
    sqrt_a, sqrt_b, c_orig, c_samp = _ddpm_coeffs()
    temb_sin = jnp.asarray(_timestep_embedding_np(999.0, UCH))
    kernel = functools.partial(
        _unet_ddpm_kernel, batch=batch, hw=hw, seq=SEQ, uch=UCH,
        sqrt_beta=sqrt_b, inv_sqrt_alpha=1.0 / sqrt_a,
        coeff_orig=c_orig, coeff_sample=c_samp)
    return pl.pallas_call(
        kernel,
        out_shape=jax.ShapeDtypeStruct((M, LATENT_C), jnp.float32),
    )(lat, temb_sin, ehs_bf16,
      params["unet_w_in"], params["unet_b_in"],
      params["unet_w_temb"], params["unet_b_temb"],
      params["unet_w_q"], params["unet_b_q"],
      params["unet_w_kv"], params["unet_b_kv"],
      params["unet_w_o"], params["unet_b_o"],
      params["unet_w_out"], params["unet_b_out"])


def vae_decode(params, z):
    M = z.shape[0]
    assert M % ROW_TILE == 0
    out_n = PATCH * PATCH * IMG_C
    weights = (params["dec_w1"], params["dec_b1"], params["dec_w2"],
               params["dec_b2"], params["dec_w3"], params["dec_b3"])
    return pl.pallas_call(
        _vae_decode_kernel,
        out_shape=jax.ShapeDtypeStruct((M, out_n), jnp.float32),
        grid=(M // ROW_TILE,),
        in_specs=[_rows(ROW_TILE, LATENT_C)] + [_whole(w) for w in weights],
        out_specs=_rows(ROW_TILE, out_n),
        compiler_params=pltpu.CompilerParams(
            dimension_semantics=("parallel",)),
    )(z, *weights)


# ---------------------------------------------------------------------------
# Scheduler / embedding constants (trace-time numpy)
# ---------------------------------------------------------------------------
def _ddpm_coeffs():
    # DDPMScheduler (scaled_linear, beta 0.00085..0.012, 1000 train steps),
    # num_inference_steps=1, timestep=999 -> prev_timestep = -1.
    betas = np.linspace(0.00085 ** 0.5, 0.012 ** 0.5, 1000,
                        dtype=np.float64) ** 2
    alphas = 1.0 - betas
    ac = np.cumprod(alphas)
    t = 999
    alpha_prod_t = ac[t]
    alpha_prod_prev = 1.0
    beta_prod_t = 1.0 - alpha_prod_t
    current_alpha = alpha_prod_t / alpha_prod_prev
    current_beta = 1.0 - current_alpha
    coeff_orig = (alpha_prod_prev ** 0.5) * current_beta / beta_prod_t
    coeff_sample = (current_alpha ** 0.5) * (1.0 - alpha_prod_prev) / beta_prod_t
    return (float(alpha_prod_t ** 0.5), float(beta_prod_t ** 0.5),
            float(coeff_orig), float(coeff_sample))


def _timestep_embedding_np(t, dim):
    half = dim // 2
    freqs = np.exp(-math.log(10000.0) * np.arange(half, dtype=np.float64) / half)
    args = float(t) * freqs
    return np.concatenate([np.sin(args), np.cos(args)])[None, :].astype(np.float32)


# ---------------------------------------------------------------------------
# Full OSEDiff_gen.forward
# ---------------------------------------------------------------------------
def osediff_gen_forward(params, c_t, prompt_ids, neg_prompt_ids, noise_key):
    """c_t: [B,3,H,W] NCHW f32.  Returns (output_image, x_denoised,
    prompt_embeds, neg_prompt_embeds) matching the PyTorch module."""
    B, _, H, W = c_t.shape
    Hq, Wq = H // PATCH, W // PATCH

    # --- vae.encode(c_t).latent_dist.sample() * scaling_factor --------------
    x = jnp.transpose(c_t, (0, 2, 3, 1))                        # NCHW -> NHWC
    # space-to-depth patchify (spatial pixels onto the lane axis); the fused
    # encoder kernel then runs the conv stack + sampling in one pallas_call.
    x_cols = x.reshape(B, Hq, PATCH, Wq, PATCH, IMG_C)
    x_cols = x_cols.transpose(0, 1, 3, 2, 4, 5).reshape(
        B * Hq * Wq, PATCH * PATCH * IMG_C)
    eps = jax.random.normal(noise_key, (B * Hq * Wq, LATENT_C), jnp.float32)
    encoded_control = vae_encode_sample(params, x_cols, eps)    # (B*Hq*Wq, 4)

    # --- encode_prompt for prompt and neg_prompt (one fused call) -----------
    both_ids = jnp.concatenate([prompt_ids, neg_prompt_ids], axis=0)
    emb = jnp.take(params["txt_embed"], both_ids, axis=0) + params["txt_pos"][None]
    proj = text_project(params, emb.reshape(2 * B * SEQ, HIDDEN))
    proj = proj.reshape(2 * B, SEQ, HIDDEN)
    prompt_embeds, neg_prompt_embeds = proj[:B], proj[B:]

    # --- unet(encoded_control, 999, enc_hidden=prompt.bf16) + DDPM step -----
    ehs_bf16 = prompt_embeds.astype(jnp.bfloat16).reshape(B * SEQ, HIDDEN)
    x_denoised = unet_ddpm_step(params, encoded_control, ehs_bf16)

    # --- vae.decode(x_denoised / scaling_factor).clamp(-1, 1) ---------------
    # 1/scaling_factor is folded into dec_w1; clamp is fused in the kernel.
    img_cols = vae_decode(params, x_denoised)                   # (B*Hq*Wq, 48)
    img = img_cols.reshape(B, Hq, Wq, PATCH, PATCH, IMG_C)
    img = img.transpose(0, 1, 3, 2, 4, 5).reshape(B, H, W, IMG_C)

    output_image = jnp.transpose(img, (0, 3, 1, 2))             # NHWC -> NCHW
    x_den_nchw = jnp.transpose(
        x_denoised.reshape(B, Hq, Wq, LATENT_C), (0, 3, 1, 2))
    return output_image, x_den_nchw, prompt_embeds, neg_prompt_embeds


# ---------------------------------------------------------------------------
# Deterministic parameter initialization + inference-time preparation
# ---------------------------------------------------------------------------
_W_KEYS = ["txt_proj_w", "enc_w1", "enc_w2", "enc_wm", "enc_wv",
           "unet_w_in", "unet_w_temb", "unet_w_q", "unet_w_kv",
           "unet_w_o", "unet_w_out", "dec_w1", "dec_w2", "dec_w3"]
_B_KEYS = ["txt_proj_b", "enc_b1", "enc_b2", "enc_bm", "enc_bv",
           "unet_b_in", "unet_b_temb", "unet_b_q", "unet_b_kv",
           "unet_b_o", "unet_b_out", "dec_b1", "dec_b2", "dec_b3"]


def init_params(key):
    keys = jax.random.split(key, 16)

    def w(k, shape, scale=0.1):
        return scale * jax.random.normal(k, shape, dtype=jnp.float32)

    def z(n):
        return jnp.zeros((n,), jnp.float32)

    p = {}
    # text encoder (stand-in for tokenizer + CLIPTextModel)
    p["txt_embed"] = w(keys[0], (VOCAB, HIDDEN))
    p["txt_pos"] = w(keys[1], (SEQ, HIDDEN))
    p["txt_proj_w"] = w(keys[2], (HIDDEN, HIDDEN)); p["txt_proj_b"] = z(HIDDEN)
    # VAE encoder (stand-in for AutoencoderKL.encode + quant_conv)
    p["enc_w1"] = w(keys[3], (PATCH * PATCH * IMG_C, ENC_CH)); p["enc_b1"] = z(ENC_CH)
    p["enc_w2"] = w(keys[4], (ENC_CH, ENC_CH)); p["enc_b2"] = z(ENC_CH)
    p["enc_wm"] = w(keys[5], (ENC_CH, LATENT_C)); p["enc_bm"] = z(LATENT_C)
    p["enc_wv"] = w(keys[6], (ENC_CH, LATENT_C)); p["enc_bv"] = z(LATENT_C)
    # UNet (stand-in for UNet2DConditionModel)
    p["unet_w_in"] = w(keys[7], (LATENT_C, UCH)); p["unet_b_in"] = z(UCH)
    p["unet_w_temb"] = w(keys[8], (UCH, UCH)); p["unet_b_temb"] = z(UCH)
    p["unet_w_q"] = w(keys[9], (UCH, UCH)); p["unet_b_q"] = z(UCH)
    p["unet_w_kv"] = w(keys[10], (HIDDEN, 2 * UCH)); p["unet_b_kv"] = z(2 * UCH)
    p["unet_w_o"] = w(keys[11], (UCH, UCH)); p["unet_b_o"] = z(UCH)
    p["unet_w_out"] = w(keys[12], (UCH, LATENT_C)); p["unet_b_out"] = z(LATENT_C)
    # VAE decoder (stand-in for AutoencoderKL.decode; pixel-shuffle output)
    p["dec_w1"] = w(keys[13], (LATENT_C, DEC_CH)); p["dec_b1"] = z(DEC_CH)
    p["dec_w2"] = w(keys[14], (DEC_CH, DEC_CH)); p["dec_b2"] = z(DEC_CH)
    p["dec_w3"] = w(keys[15], (DEC_CH, PATCH * PATCH * IMG_C))
    p["dec_b3"] = z(PATCH * PATCH * IMG_C)
    return p


def prepare_inference_params(p):
    """Fold constants into weights and pre-cast to MXU-native bf16 once."""
    q = dict(p)
    attn_scale = 1.0 / math.sqrt(UCH)
    q["unet_w_q"] = q["unet_w_q"] * attn_scale      # fold 1/sqrt(d) into q-proj
    q["unet_b_q"] = q["unet_b_q"] * attn_scale
    q["dec_w1"] = q["dec_w1"] / SCALING_FACTOR      # fold x_denoised / scale
    for k in _W_KEYS:
        q[k] = q[k].astype(jnp.bfloat16)            # bf16 MXU operands
    for k in _B_KEYS:
        q[k] = jnp.reshape(q[k], (1, -1)).astype(jnp.float32)
    return q


# ---------------------------------------------------------------------------
if __name__ == "__main__":
    key = jax.random.PRNGKey(0)
    k_param, k_input, k_noise, k_tok1, k_tok2 = jax.random.split(key, 5)

    params = prepare_inference_params(init_params(k_param))

    B, H, W = 2, 16, 16
    c_t = jax.random.uniform(k_input, (B, IMG_C, H, W),
                             minval=-1.0, maxval=1.0, dtype=jnp.float32)
    prompt_ids = jax.random.randint(k_tok1, (B, SEQ), 0, VOCAB)
    neg_prompt_ids = jax.random.randint(k_tok2, (B, SEQ), 0, VOCAB)

    fwd = jax.jit(osediff_gen_forward)
    output_image, x_denoised, prompt_embeds, neg_prompt_embeds = fwd(
        params, c_t, prompt_ids, neg_prompt_ids, k_noise)
    jax.block_until_ready((output_image, x_denoised, prompt_embeds,
                           neg_prompt_embeds))

    assert output_image.shape == (B, IMG_C, H, W)
    assert x_denoised.shape == (B, LATENT_C, H // PATCH, W // PATCH)
    assert prompt_embeds.shape == (B, SEQ, HIDDEN)
    assert neg_prompt_embeds.shape == (B, SEQ, HIDDEN)
    assert bool(jnp.all(jnp.isfinite(output_image)))
    assert float(jnp.max(jnp.abs(output_image))) <= 1.0 + 1e-6

    print("KERNEL_OK")
</pallas_src>

<mosaic_0001>
module attributes {stable_mosaic.version = 11 : i64} {
  func.func @_vae_encode_kernel(%arg0: i32, %arg1: memref<16x48xf32, #tpu.memory_space<vmem>>, %arg2: memref<16x4xf32, #tpu.memory_space<vmem>>, %arg3: memref<48x32xbf16, #tpu.memory_space<vmem>>, %arg4: memref<1x32xf32, #tpu.memory_space<vmem>>, %arg5: memref<32x32xbf16, #tpu.memory_space<vmem>>, %arg6: memref<1x32xf32, #tpu.memory_space<vmem>>, %arg7: memref<32x4xbf16, #tpu.memory_space<vmem>>, %arg8: memref<1x4xf32, #tpu.memory_space<vmem>>, %arg9: memref<32x4xbf16, #tpu.memory_space<vmem>>, %arg10: memref<1x4xf32, #tpu.memory_space<vmem>>, %arg11: memref<16x4xf32, #tpu.memory_space<vmem>>) attributes {dimension_semantics = [#tpu.dimension_semantics<parallel>], iteration_bounds = array<i64: 2>, scalar_prefetch = 0 : i64, scratch_operands = 0 : i64, tpu.core_type = #tpu.core_type<tc>, window_params = [{transform_indices = @transform_0, window_bounds = array<i64: 16, 48>}, {transform_indices = @transform_1, window_bounds = array<i64: 16, 4>}, {pipeline_mode = #tpu.pipeline_mode<synchronous>, transform_indices = @transform_2, window_bounds = array<i64: 48, 32>}, {pipeline_mode = #tpu.pipeline_mode<synchronous>, transform_indices = @transform_3, window_bounds = array<i64: 1, 32>}, {pipeline_mode = #tpu.pipeline_mode<synchronous>, transform_indices = @transform_4, window_bounds = array<i64: 32, 32>}, {pipeline_mode = #tpu.pipeline_mode<synchronous>, transform_indices = @transform_5, window_bounds = array<i64: 1, 32>}, {pipeline_mode = #tpu.pipeline_mode<synchronous>, transform_indices = @transform_6, window_bounds = array<i64: 32, 4>}, {pipeline_mode = #tpu.pipeline_mode<synchronous>, transform_indices = @transform_7, window_bounds = array<i64: 1, 4>}, {pipeline_mode = #tpu.pipeline_mode<synchronous>, transform_indices = @transform_8, window_bounds = array<i64: 32, 4>}, {pipeline_mode = #tpu.pipeline_mode<synchronous>, transform_indices = @transform_9, window_bounds = array<i64: 1, 4>}, {transform_indices = @transform_10, window_bounds = array<i64: 16, 4>}]} {
    %c0 = arith.constant 0 : index
    %c0_0 = arith.constant 0 : index
    %0 = vector.load %arg1[%c0, %c0_0] : memref<16x48xf32, #tpu.memory_space<vmem>>, vector<16x48xf32>
    %1 = arith.truncf %0 : vector<16x48xf32> to vector<16x48xbf16>
    %c0_1 = arith.constant 0 : index
    %c0_2 = arith.constant 0 : index
    %2 = vector.load %arg3[%c0_1, %c0_2] : memref<48x32xbf16, #tpu.memory_space<vmem>>, vector<48x32xbf16>
    %cst = arith.constant dense<0.000000e+00> : vector<16x32xf32>
    %3 = tpu.matmul %1, %2, %cst {dimension_numbers = #tpu.dot_dimension_numbers<[1], [0], [0], [1], [0, 0, 1, 1], [], []>} : vector<16x48xbf16>, vector<48x32xbf16>, vector<16x32xf32> -> vector<16x32xf32>
    %c0_3 = arith.constant 0 : index
    %c0_4 = arith.constant 0 : index
    %4 = vector.load %arg4[%c0_3, %c0_4] : memref<1x32xf32, #tpu.memory_space<vmem>>, vector<1x32xf32>
    %5 = vector.broadcast %4 : vector<1x32xf32> to vector<16x32xf32>
    %6 = arith.addf %3, %5 : vector<16x32xf32>
    %7 = arith.negf %6 : vector<16x32xf32>
    %8 = math.exp %7 : vector<16x32xf32>
    %cst_5 = arith.constant 1.000000e+00 : f32
    %9 = vector.broadcast %cst_5 : f32 to vector<16x32xf32>
    %10 = arith.addf %9, %8 : vector<16x32xf32>
    %11 = arith.divf %9, %10 : vector<16x32xf32>
    %12 = arith.mulf %6, %11 : vector<16x32xf32>
    %13 = arith.truncf %12 : vector<16x32xf32> to vector<16x32xbf16>
    %c0_6 = arith.constant 0 : index
    %c0_7 = arith.constant 0 : index
    %14 = vector.load %arg5[%c0_6, %c0_7] : memref<32x32xbf16, #tpu.memory_space<vmem>>, vector<32x32xbf16>
    %cst_8 = arith.constant dense<0.000000e+00> : vector<16x32xf32>
    %15 = tpu.matmul %13, %14, %cst_8 {dimension_numbers = #tpu.dot_dimension_numbers<[1], [0], [0], [1], [0, 0, 1, 1], [], []>} : vector<16x32xbf16>, vector<32x32xbf16>, vector<16x32xf32> -> vector<16x32xf32>
    %c0_9 = arith.constant 0 : index
    %c0_10 = arith.constant 0 : index
    %16 = vector.load %arg6[%c0_9, %c0_10] : memref<1x32xf32, #tpu.memory_space<vmem>>, vector<1x32xf32>
    %17 = vector.broadcast %16 : vector<1x32xf32> to vector<16x32xf32>
    %18 = arith.addf %15, %17 : vector<16x32xf32>
    %19 = arith.negf %18 : vector<16x32xf32>
    %20 = math.exp %19 : vector<16x32xf32>
    %cst_11 = arith.constant 1.000000e+00 : f32
    %21 = vector.broadcast %cst_11 : f32 to vector<16x32xf32>
    %22 = arith.addf %21, %20 : vector<16x32xf32>
    %23 = arith.divf %21, %22 : vector<16x32xf32>
    %24 = arith.mulf %18, %23 : vector<16x32xf32>
    %25 = arith.truncf %24 : vector<16x32xf32> to vector<16x32xbf16>
    %c0_12 = arith.constant 0 : index
    %c0_13 = arith.constant 0 : index
    %26 = vector.load %arg7[%c0_12, %c0_13] : memref<32x4xbf16, #tpu.memory_space<vmem>>, vector<32x4xbf16>
    %cst_14 = arith.constant dense<0.000000e+00> : vector<16x4xf32>
    %27 = tpu.matmul %25, %26, %cst_14 {dimension_numbers = #tpu.dot_dimension_numbers<[1], [0], [0], [1], [0, 0, 1, 1], [], []>} : vector<16x32xbf16>, vector<32x4xbf16>, vector<16x4xf32> -> vector<16x4xf32>
    %c0_15 = arith.constant 0 : index
    %c0_16 = arith.constant 0 : index
    %28 = vector.load %arg8[%c0_15, %c0_16] : memref<1x4xf32, #tpu.memory_space<vmem>>, vector<1x4xf32>
    %29 = vector.broadcast %28 : vector<1x4xf32> to vector<16x4xf32>
    %30 = arith.addf %27, %29 : vector<16x4xf32>
    %31 = arith.truncf %24 : vector<16x32xf32> to vector<16x32xbf16>
    %c0_17 = arith.constant 0 : index
    %c0_18 = arith.constant 0 : index
    %32 = vector.load %arg9[%c0_17, %c0_18] : memref<32x4xbf16, #tpu.memory_space<vmem>>, vector<32x4xbf16>
    %cst_19 = arith.constant dense<0.000000e+00> : vector<16x4xf32>
    %33 = tpu.matmul %31, %32, %cst_19 {dimension_numbers = #tpu.dot_dimension_numbers<[1], [0], [0], [1], [0, 0, 1, 1], [], []>} : vector<16x32xbf16>, vector<32x4xbf16>, vector<16x4xf32> -> vector<16x4xf32>
    %c0_20 = arith.constant 0 : index
    %c0_21 = arith.constant 0 : index
    %34 = vector.load %arg10[%c0_20, %c0_21] : memref<1x4xf32, #tpu.memory_space<vmem>>, vector<1x4xf32>
    %35 = vector.broadcast %34 : vector<1x4xf32> to vector<16x4xf32>
    %36 = arith.addf %33, %35 : vector<16x4xf32>
    %cst_22 = arith.constant -3.000000e+01 : f32
    %cst_23 = arith.constant 2.000000e+01 : f32
    %37 = vector.broadcast %cst_22 : f32 to vector<16x4xf32>
    %38 = arith.maximumf %37, %36 : vector<16x4xf32>
    %39 = vector.broadcast %cst_23 : f32 to vector<16x4xf32>
    %40 = arith.minimumf %39, %38 : vector<16x4xf32>
    %cst_24 = arith.constant 5.000000e-01 : f32
    %41 = vector.broadcast %cst_24 : f32 to vector<16x4xf32>
    %42 = arith.mulf %41, %40 : vector<16x4xf32>
    %43 = math.exp %42 : vector<16x4xf32>
    %c0_25 = arith.constant 0 : index
    %c0_26 = arith.constant 0 : index
    %44 = vector.load %arg2[%c0_25, %c0_26] : memref<16x4xf32, #tpu.memory_space<vmem>>, vector<16x4xf32>
    %45 = arith.mulf %43, %44 : vector<16x4xf32>
    %46 = arith.addf %30, %45 : vector<16x4xf32>
    %cst_27 = arith.constant 1.821500e-01 : f32
    %47 = vector.broadcast %cst_27 : f32 to vector<16x4xf32>
    %48 = arith.mulf %46, %47 : vector<16x4xf32>
    %c0_28 = arith.constant 0 : index
    %c0_29 = arith.constant 0 : index
    %49 = vector.load %arg11[%c0_28, %c0_29] : memref<16x4xf32, #tpu.memory_space<vmem>>, vector<16x4xf32>
    tpu.vector_store %arg11[%c0_28, %c0_29], %48 {strides = array<i32>} : memref<16x4xf32, #tpu.memory_space<vmem>>, vector<16x4xf32>,
    return
  }
  func.func @transform_0(%arg0: i32) -> (i32, i32) {
    %c0_i32 = arith.constant 0 : i32
    %c0_i32_0 = arith.constant 0 : i32
    return %arg0, %c0_i32 : i32, i32
  }
  func.func @transform_1(%arg0: i32) -> (i32, i32) {
    %c0_i32 = arith.constant 0 : i32
    %c0_i32_0 = arith.constant 0 : i32
    return %arg0, %c0_i32 : i32, i32
  }
  func.func @transform_2(%arg0: i32) -> (i32, i32) {
    %c0_i32 = arith.constant 0 : i32
    %c0_i32_0 = arith.constant 0 : i32
    %c0_i32_1 = arith.constant 0 : i32
    return %c0_i32, %c0_i32_0 : i32, i32
  }
  func.func @transform_3(%arg0: i32) -> (i32, i32) {
    %c0_i32 = arith.constant 0 : i32
    %c0_i32_0 = arith.constant 0 : i32
    %c0_i32_1 = arith.constant 0 : i32
    return %c0_i32, %c0_i32_0 : i32, i32
  }
  func.func @transform_4(%arg0: i32) -> (i32, i32) {
    %c0_i32 = arith.constant 0 : i32
    %c0_i32_0 = arith.constant 0 : i32
    %c0_i32_1 = arith.constant 0 : i32
    return %c0_i32, %c0_i32_0 : i32, i32
  }
  func.func @transform_5(%arg0: i32) -> (i32, i32) {
    %c0_i32 = arith.constant 0 : i32
    %c0_i32_0 = arith.constant 0 : i32
    %c0_i32_1 = arith.constant 0 : i32
    return %c0_i32, %c0_i32_0 : i32, i32
  }
  func.func @transform_6(%arg0: i32) -> (i32, i32) {
    %c0_i32 = arith.constant 0 : i32
    %c0_i32_0 = arith.constant 0 : i32
    %c0_i32_1 = arith.constant 0 : i32
    return %c0_i32, %c0_i32_0 : i32, i32
  }
  func.func @transform_7(%arg0: i32) -> (i32, i32) {
    %c0_i32 = arith.constant 0 : i32
    %c0_i32_0 = arith.constant 0 : i32
    %c0_i32_1 = arith.constant 0 : i32
    return %c0_i32, %c0_i32_0 : i32, i32
  }
  func.func @transform_8(%arg0: i32) -> (i32, i32) {
    %c0_i32 = arith.constant 0 : i32
    %c0_i32_0 = arith.constant 0 : i32
    %c0_i32_1 = arith.constant 0 : i32
    return %c0_i32, %c0_i32_0 : i32, i32
  }
  func.func @transform_9(%arg0: i32) -> (i32, i32) {
    %c0_i32 = arith.constant 0 : i32
    %c0_i32_0 = arith.constant 0 : i32
    %c0_i32_1 = arith.constant 0 : i32
    return %c0_i32, %c0_i32_0 : i32, i32
  }
  func.func @transform_10(%arg0: i32) -> (i32, i32) {
    %c0_i32 = arith.constant 0 : i32
    %c0_i32_0 = arith.constant 0 : i32
    return %arg0, %c0_i32 : i32, i32
  }
}

module attributes {stable_mosaic.version = 11 : i64} {
  func.func @_text_proj_kernel(%arg0: memref<32x32xf32, #tpu.memory_space<vmem>>, %arg1: memref<32x32xbf16, #tpu.memory_space<vmem>>, %arg2: memref<1x32xf32, #tpu.memory_space<vmem>>, %arg3: memref<32x32xf32, #tpu.memory_space<vmem>>) attributes {dimension_semantics = [], scalar_prefetch = 0 : i64, scratch_operands = 0 : i64, tpu.core_type = #tpu.core_type<tc>} {
    %c0 = arith.constant 0 : index
    %c0_0 = arith.constant 0 : index
    %0 = vector.load %arg0[%c0, %c0_0] : memref<32x32xf32, #tpu.memory_space<vmem>>, vector<32x32xf32>
    %1 = arith.truncf %0 : vector<32x32xf32> to vector<32x32xbf16>
    %c0_1 = arith.constant 0 : index
    %c0_2 = arith.constant 0 : index
    %2 = vector.load %arg1[%c0_1, %c0_2] : memref<32x32xbf16, #tpu.memory_space<vmem>>, vector<32x32xbf16>
    %cst = arith.constant dense<0.000000e+00> : vector<32x32xf32>
    %3 = tpu.matmul %1, %2, %cst {dimension_numbers = #tpu.dot_dimension_numbers<[1], [0], [0], [1], [0, 0, 1, 1], [], []>} : vector<32x32xbf16>, vector<32x32xbf16>, vector<32x32xf32> -> vector<32x32xf32>
    %c0_3 = arith.constant 0 : index
    %c0_4 = arith.constant 0 : index
    %4 = vector.load %arg2[%c0_3, %c0_4] : memref<1x32xf32, #tpu.memory_space<vmem>>, vector<1x32xf32>
    %5 = vector.broadcast %4 : vector<1x32xf32> to vector<32x32xf32>
    %6 = arith.addf %3, %5 : vector<32x32xf32>
    %c0_5 = arith.constant 0 : index
    %c0_6 = arith.constant 0 : index
    %7 = vector.load %arg3[%c0_5, %c0_6] : memref<32x32xf32, #tpu.memory_space<vmem>>, vector<32x32xf32>
    tpu.vector_store %arg3[%c0_5, %c0_6], %6 {strides = array<i32>} : memref<32x32xf32, #tpu.memory_space<vmem>>, vector<32x32xf32>,
    return
  }
}

module attributes {stable_mosaic.version = 11 : i64} {
  func.func @_unet_ddpm_kernel(%arg0: memref<32x4xf32, #tpu.memory_space<vmem>>, %arg1: memref<1x32xf32, #tpu.memory_space<vmem>>, %arg2: memref<16x32xbf16, #tpu.memory_space<vmem>>, %arg3: memref<4x32xbf16, #tpu.memory_space<vmem>>, %arg4: memref<1x32xf32, #tpu.memory_space<vmem>>, %arg5: memref<32x32xbf16, #tpu.memory_space<vmem>>, %arg6: memref<1x32xf32, #tpu.memory_space<vmem>>, %arg7: memref<32x32xbf16, #tpu.memory_space<vmem>>, %arg8: memref<1x32xf32, #tpu.memory_space<vmem>>, %arg9: memref<32x64xbf16, #tpu.memory_space<vmem>>, %arg10: memref<1x64xf32, #tpu.memory_space<vmem>>, %arg11: memref<32x32xbf16, #tpu.memory_space<vmem>>, %arg12: memref<1x32xf32, #tpu.memory_space<vmem>>, %arg13: memref<32x4xbf16, #tpu.memory_space<vmem>>, %arg14: memref<1x4xf32, #tpu.memory_space<vmem>>, %arg15: memref<32x4xf32, #tpu.memory_space<vmem>>) attributes {dimension_semantics = [], scalar_prefetch = 0 : i64, scratch_operands = 0 : i64, tpu.core_type = #tpu.core_type<tc>} {
    %c0 = arith.constant 0 : index
    %c0_0 = arith.constant 0 : index
    %0 = vector.load %arg0[%c0, %c0_0] : memref<32x4xf32, #tpu.memory_space<vmem>>, vector<32x4xf32>
    %1 = arith.truncf %0 : vector<32x4xf32> to vector<32x4xbf16>
    %c0_1 = arith.constant 0 : index
    %c0_2 = arith.constant 0 : index
    %2 = vector.load %arg3[%c0_1, %c0_2] : memref<4x32xbf16, #tpu.memory_space<vmem>>, vector<4x32xbf16>
    %cst = arith.constant dense<0.000000e+00> : vector<32x32xf32>
    %3 = tpu.matmul %1, %2, %cst {dimension_numbers = #tpu.dot_dimension_numbers<[1], [0], [0], [1], [0, 0, 1, 1], [], []>} : vector<32x4xbf16>, vector<4x32xbf16>, vector<32x32xf32> -> vector<32x32xf32>
    %c0_3 = arith.constant 0 : index
    %c0_4 = arith.constant 0 : index
    %4 = vector.load %arg4[%c0_3, %c0_4] : memref<1x32xf32, #tpu.memory_space<vmem>>, vector<1x32xf32>
    %5 = vector.broadcast %4 : vector<1x32xf32> to vector<32x32xf32>
    %6 = arith.addf %3, %5 : vector<32x32xf32>
    %c0_5 = arith.constant 0 : index
    %c0_6 = arith.constant 0 : index
    %7 = vector.load %arg1[%c0_5, %c0_6] : memref<1x32xf32, #tpu.memory_space<vmem>>, vector<1x32xf32>
    %8 = arith.truncf %7 : vector<1x32xf32> to vector<1x32xbf16>
    %c0_7 = arith.constant 0 : index
    %c0_8 = arith.constant 0 : index
    %9 = vector.load %arg5[%c0_7, %c0_8] : memref<32x32xbf16, #tpu.memory_space<vmem>>, vector<32x32xbf16>
    %cst_9 = arith.constant dense<0.000000e+00> : vector<1x32xf32>
    %10 = tpu.matmul %8, %9, %cst_9 {dimension_numbers = #tpu.dot_dimension_numbers<[1], [0], [0], [1], [0, 0, 1, 1], [], []>} : vector<1x32xbf16>, vector<32x32xbf16>, vector<1x32xf32> -> vector<1x32xf32>
    %c0_10 = arith.constant 0 : index
    %c0_11 = arith.constant 0 : index
    %11 = vector.load %arg6[%c0_10, %c0_11] : memref<1x32xf32, #tpu.memory_space<vmem>>, vector<1x32xf32>
    %12 = arith.addf %10, %11 : vector<1x32xf32>
    %13 = arith.negf %12 : vector<1x32xf32>
    %14 = math.exp %13 : vector<1x32xf32>
    %cst_12 = arith.constant 1.000000e+00 : f32
    %15 = vector.broadcast %cst_12 : f32 to vector<1x32xf32>
    %16 = arith.addf %15, %14 : vector<1x32xf32>
    %17 = arith.divf %15, %16 : vector<1x32xf32>
    %18 = arith.mulf %12, %17 : vector<1x32xf32>
    %19 = vector.broadcast %18 : vector<1x32xf32> to vector<32x32xf32>
    %20 = arith.addf %6, %19 : vector<32x32xf32>
    %21 = arith.truncf %20 : vector<32x32xf32> to vector<32x32xbf16>
    %c0_13 = arith.constant 0 : index
    %c0_14 = arith.constant 0 : index
    %22 = vector.load %arg7[%c0_13, %c0_14] : memref<32x32xbf16, #tpu.memory_space<vmem>>, vector<32x32xbf16>
    %cst_15 = arith.constant dense<0.000000e+00> : vector<32x32xf32>
    %23 = tpu.matmul %21, %22, %cst_15 {dimension_numbers = #tpu.dot_dimension_numbers<[1], [0], [0], [1], [0, 0, 1, 1], [], []>} : vector<32x32xbf16>, vector<32x32xbf16>, vector<32x32xf32> -> vector<32x32xf32>
    %c0_16 = arith.constant 0 : index
    %c0_17 = arith.constant 0 : index
    %24 = vector.load %arg8[%c0_16, %c0_17] : memref<1x32xf32, #tpu.memory_space<vmem>>, vector<1x32xf32>
    %25 = vector.broadcast %24 : vector<1x32xf32> to vector<32x32xf32>
    %26 = arith.addf %23, %25 : vector<32x32xf32>
    %c0_18 = arith.constant 0 : index
    %c0_19 = arith.constant 0 : index
    %27 = vector.load %arg2[%c0_18, %c0_19] : memref<16x32xbf16, #tpu.memory_space<vmem>>, vector<16x32xbf16>
    %c0_20 = arith.constant 0 : index
    %c0_21 = arith.constant 0 : index
    %28 = vector.load %arg9[%c0_20, %c0_21] : memref<32x64xbf16, #tpu.memory_space<vmem>>, vector<32x64xbf16>
    %cst_22 = arith.constant dense<0.000000e+00> : vector<16x64xf32>
    %29 = tpu.matmul %27, %28, %cst_22 {dimension_numbers = #tpu.dot_dimension_numbers<[1], [0], [0], [1], [0, 0, 1, 1], [], []>} : vector<16x32xbf16>, vector<32x64xbf16>, vector<16x64xf32> -> vector<16x64xf32>
    %c0_23 = arith.constant 0 : index
    %c0_24 = arith.constant 0 : index
    %30 = vector.load %arg10[%c0_23, %c0_24] : memref<1x64xf32, #tpu.memory_space<vmem>>, vector<1x64xf32>
    %31 = vector.broadcast %30 : vector<1x64xf32> to vector<16x64xf32>
    %32 = arith.addf %29, %31 : vector<16x64xf32>
    %33 = vector.extract_strided_slice %26 {offsets = [0, 0], sizes = [16, 32], strides = [1, 1]} : vector<32x32xf32> to vector<16x32xf32>
    %34 = vector.extract_strided_slice %32 {offsets = [0, 0], sizes = [8, 64], strides = [1, 1]} : vector<16x64xf32> to vector<8x64xf32>
    %35 = vector.extract_strided_slice %34 {offsets = [0, 0], sizes = [8, 32], strides = [1, 1]} : vector<8x64xf32> to vector<8x32xf32>
    %36 = arith.truncf %35 : vector<8x32xf32> to vector<8x32xbf16>
    %37 = vector.extract_strided_slice %34 {offsets = [0, 32], sizes = [8, 32], strides = [1, 1]} : vector<8x64xf32> to vector<8x32xf32>
    %38 = arith.truncf %37 : vector<8x32xf32> to vector<8x32xbf16>
    %39 = arith.truncf %33 : vector<16x32xf32> to vector<16x32xbf16>
    %cst_25 = arith.constant dense<0.000000e+00> : vector<16x8xf32>
    %40 = tpu.matmul %39, %36, %cst_25 {dimension_numbers = #tpu.dot_dimension_numbers<[1], [1], [0], [0], [0, 0, 1, 0], [], []>} : vector<16x32xbf16>, vector<8x32xbf16>, vector<16x8xf32> -> vector<16x8xf32>
    %cst_26 = arith.constant dense<0xFF800000> : vector<16xf32>
    %41 = vector.multi_reduction <maximumf>, %40, %cst_26 [1] : vector<16x8xf32> to vector<16xf32>
    %42 = vector.shape_cast %41 : vector<16xf32> to vector<16x1xf32>
    %43 = vector.broadcast %42 : vector<16x1xf32> to vector<16x8xf32>
    %44 = arith.subf %40, %43 : vector<16x8xf32>
    %45 = math.exp %44 : vector<16x8xf32>
    %cst_27 = arith.constant dense<0.000000e+00> : vector<16xf32>
    %46 = vector.multi_reduction <add>, %45, %cst_27 [1] : vector<16x8xf32> to vector<16xf32>
    %47 = vector.shape_cast %46 : vector<16xf32> to vector<16x1xf32>
    %48 = tpu.reciprocal %47 {approx = true} : vector<16x1xf32> -> vector<16x1xf32>
    %49 = vector.broadcast %48 : vector<16x1xf32> to vector<16x8xf32>
    %50 = arith.mulf %45, %49 : vector<16x8xf32>
    %51 = arith.truncf %50 : vector<16x8xf32> to vector<16x8xbf16>
    %cst_28 = arith.constant dense<0.000000e+00> : vector<16x32xf32>
    %52 = tpu.matmul %51, %38, %cst_28 {dimension_numbers = #tpu.dot_dimension_numbers<[1], [0], [0], [1], [0, 0, 1, 1], [], []>} : vector<16x8xbf16>, vector<8x32xbf16>, vector<16x32xf32> -> vector<16x32xf32>
    %53 = vector.extract_strided_slice %26 {offsets = [16, 0], sizes = [16, 32], strides = [1, 1]} : vector<32x32xf32> to vector<16x32xf32>
    %54 = vector.extract_strided_slice %32 {offsets = [8, 0], sizes = [8, 64], strides = [1, 1]} : vector<16x64xf32> to vector<8x64xf32>
    %55 = vector.extract_strided_slice %54 {offsets = [0, 0], sizes = [8, 32], strides = [1, 1]} : vector<8x64xf32> to vector<8x32xf32>
    %56 = arith.truncf %55 : vector<8x32xf32> to vector<8x32xbf16>
    %57 = vector.extract_strided_slice %54 {offsets = [0, 32], sizes = [8, 32], strides = [1, 1]} : vector<8x64xf32> to vector<8x32xf32>
    %58 = arith.truncf %57 : vector<8x32xf32> to vector<8x32xbf16>
    %59 = arith.truncf %53 : vector<16x32xf32> to vector<16x32xbf16>
    %cst_29 = arith.constant dense<0.000000e+00> : vector<16x8xf32>
    %60 = tpu.matmul %59, %56, %cst_29 {dimension_numbers = #tpu.dot_dimension_numbers<[1], [1], [0], [0], [0, 0, 1, 0], [], []>} : vector<16x32xbf16>, vector<8x32xbf16>, vector<16x8xf32> -> vector<16x8xf32>
    %cst_30 = arith.constant dense<0xFF800000> : vector<16xf32>
    %61 = vector.multi_reduction <maximumf>, %60, %cst_30 [1] : vector<16x8xf32> to vector<16xf32>
    %62 = vector.shape_cast %61 : vector<16xf32> to vector<16x1xf32>
    %63 = vector.broadcast %62 : vector<16x1xf32> to vector<16x8xf32>
    %64 = arith.subf %60, %63 : vector<16x8xf32>
    %65 = math.exp %64 : vector<16x8xf32>
    %cst_31 = arith.constant dense<0.000000e+00> : vector<16xf32>
    %66 = vector.multi_reduction <add>, %65, %cst_31 [1] : vector<16x8xf32> to vector<16xf32>
    %67 = vector.shape_cast %66 : vector<16xf32> to vector<16x1xf32>
    %68 = tpu.reciprocal %67 {approx = true} : vector<16x1xf32> -> vector<16x1xf32>
    %69 = vector.broadcast %68 : vector<16x1xf32> to vector<16x8xf32>
    %70 = arith.mulf %65, %69 : vector<16x8xf32>
    %71 = arith.truncf %70 : vector<16x8xf32> to vector<16x8xbf16>
    %cst_32 = arith.constant dense<0.000000e+00> : vector<16x32xf32>
    %72 = tpu.matmul %71, %58, %cst_32 {dimension_numbers = #tpu.dot_dimension_numbers<[1], [0], [0], [1], [0, 0, 1, 1], [], []>} : vector<16x8xbf16>, vector<8x32xbf16>, vector<16x32xf32> -> vector<16x32xf32>
    %73 = tpu.concatenate %52, %72 in 0 : vector<16x32xf32>, vector<16x32xf32> -> vector<32x32xf32>
    %74 = arith.truncf %73 : vector<32x32xf32> to vector<32x32xbf16>
    %c0_33 = arith.constant 0 : index
    %c0_34 = arith.constant 0 : index
    %75 = vector.load %arg11[%c0_33, %c0_34] : memref<32x32xbf16, #tpu.memory_space<vmem>>, vector<32x32xbf16>
    %cst_35 = arith.constant dense<0.000000e+00> : vector<32x32xf32>
    %76 = tpu.matmul %74, %75, %cst_35 {dimension_numbers = #tpu.dot_dimension_numbers<[1], [0], [0], [1], [0, 0, 1, 1], [], []>} : vector<32x32xbf16>, vector<32x32xbf16>, vector<32x32xf32> -> vector<32x32xf32>
    %c0_36 = arith.constant 0 : index
    %c0_37 = arith.constant 0 : index
    %77 = vector.load %arg12[%c0_36, %c0_37] : memref<1x32xf32, #tpu.memory_space<vmem>>, vector<1x32xf32>
    %78 = vector.broadcast %77 : vector<1x32xf32> to vector<32x32xf32>
    %79 = arith.addf %76, %78 : vector<32x32xf32>
    %80 = arith.addf %20, %79 : vector<32x32xf32>
    %81 = arith.truncf %80 : vector<32x32xf32> to vector<32x32xbf16>
    %c0_38 = arith.constant 0 : index
    %c0_39 = arith.constant 0 : index
    %82 = vector.load %arg13[%c0_38, %c0_39] : memref<32x4xbf16, #tpu.memory_space<vmem>>, vector<32x4xbf16>
    %cst_40 = arith.constant dense<0.000000e+00> : vector<32x4xf32>
    %83 = tpu.matmul %81, %82, %cst_40 {dimension_numbers = #tpu.dot_dimension_numbers<[1], [0], [0], [1], [0, 0, 1, 1], [], []>} : vector<32x32xbf16>, vector<32x4xbf16>, vector<32x4xf32> -> vector<32x4xf32>
    %c0_41 = arith.constant 0 : index
    %c0_42 = arith.constant 0 : index
    %84 = vector.load %arg14[%c0_41, %c0_42] : memref<1x4xf32, #tpu.memory_space<vmem>>, vector<1x4xf32>
    %85 = vector.broadcast %84 : vector<1x4xf32> to vector<32x4xf32>
    %86 = arith.addf %83, %85 : vector<32x4xf32>
    %cst_43 = arith.constant 0.997667253 : f32
    %87 = vector.broadcast %cst_43 : f32 to vector<32x4xf32>
    %88 = arith.mulf %87, %86 : vector<32x4xf32>
    %89 = arith.subf %0, %88 : vector<32x4xf32>
    %cst_44 = arith.constant 14.6488132 : f32
    %90 = vector.broadcast %cst_44 : f32 to vector<32x4xf32>
    %91 = arith.mulf %89, %90 : vector<32x4xf32>
    %cst_45 = arith.constant 1.000000e+00 : f32
    %92 = vector.broadcast %cst_45 : f32 to vector<32x4xf32>
    %93 = arith.mulf %92, %91 : vector<32x4xf32>
    %cst_46 = arith.constant 0.000000e+00 : f32
    %94 = vector.broadcast %cst_46 : f32 to vector<32x4xf32>
    %95 = arith.mulf %94, %0 : vector<32x4xf32>
    %96 = arith.addf %93, %95 : vector<32x4xf32>
    %c0_47 = arith.constant 0 : index
    %c0_48 = arith.constant 0 : index
    %97 = vector.load %arg15[%c0_47, %c0_48] : memref<32x4xf32, #tpu.memory_space<vmem>>, vector<32x4xf32>
    tpu.vector_store %arg15[%c0_47, %c0_48], %96 {strides = array<i32>} : memref<32x4xf32, #tpu.memory_space<vmem>>, vector<32x4xf32>,
    return
  }
}

module attributes {stable_mosaic.version = 11 : i64} {
  func.func @_vae_decode_kernel(%arg0: i32, %arg1: memref<16x4xf32, #tpu.memory_space<vmem>>, %arg2: memref<4x32xbf16, #tpu.memory_space<vmem>>, %arg3: memref<1x32xf32, #tpu.memory_space<vmem>>, %arg4: memref<32x32xbf16, #tpu.memory_space<vmem>>, %arg5: memref<1x32xf32, #tpu.memory_space<vmem>>, %arg6: memref<32x48xbf16, #tpu.memory_space<vmem>>, %arg7: memref<1x48xf32, #tpu.memory_space<vmem>>, %arg8: memref<16x48xf32, #tpu.memory_space<vmem>>) attributes {dimension_semantics = [#tpu.dimension_semantics<parallel>], iteration_bounds = array<i64: 2>, scalar_prefetch = 0 : i64, scratch_operands = 0 : i64, tpu.core_type = #tpu.core_type<tc>, window_params = [{transform_indices = @transform_0, window_bounds = array<i64: 16, 4>}, {pipeline_mode = #tpu.pipeline_mode<synchronous>, transform_indices = @transform_1, window_bounds = array<i64: 4, 32>}, {pipeline_mode = #tpu.pipeline_mode<synchronous>, transform_indices = @transform_2, window_bounds = array<i64: 1, 32>}, {pipeline_mode = #tpu.pipeline_mode<synchronous>, transform_indices = @transform_3, window_bounds = array<i64: 32, 32>}, {pipeline_mode = #tpu.pipeline_mode<synchronous>, transform_indices = @transform_4, window_bounds = array<i64: 1, 32>}, {pipeline_mode = #tpu.pipeline_mode<synchronous>, transform_indices = @transform_5, window_bounds = array<i64: 32, 48>}, {pipeline_mode = #tpu.pipeline_mode<synchronous>, transform_indices = @transform_6, window_bounds = array<i64: 1, 48>}, {transform_indices = @transform_7, window_bounds = array<i64: 16, 48>}]} {
    %c0 = arith.constant 0 : index
    %c0_0 = arith.constant 0 : index
    %0 = vector.load %arg1[%c0, %c0_0] : memref<16x4xf32, #tpu.memory_space<vmem>>, vector<16x4xf32>
    %1 = arith.truncf %0 : vector<16x4xf32> to vector<16x4xbf16>
    %c0_1 = arith.constant 0 : index
    %c0_2 = arith.constant 0 : index
    %2 = vector.load %arg2[%c0_1, %c0_2] : memref<4x32xbf16, #tpu.memory_space<vmem>>, vector<4x32xbf16>
    %cst = arith.constant dense<0.000000e+00> : vector<16x32xf32>
    %3 = tpu.matmul %1, %2, %cst {dimension_numbers = #tpu.dot_dimension_numbers<[1], [0], [0], [1], [0, 0, 1, 1], [], []>} : vector<16x4xbf16>, vector<4x32xbf16>, vector<16x32xf32> -> vector<16x32xf32>
    %c0_3 = arith.constant 0 : index
    %c0_4 = arith.constant 0 : index
    %4 = vector.load %arg3[%c0_3, %c0_4] : memref<1x32xf32, #tpu.memory_space<vmem>>, vector<1x32xf32>
    %5 = vector.broadcast %4 : vector<1x32xf32> to vector<16x32xf32>
    %6 = arith.addf %3, %5 : vector<16x32xf32>
    %7 = arith.negf %6 : vector<16x32xf32>
    %8 = math.exp %7 : vector<16x32xf32>
    %cst_5 = arith.constant 1.000000e+00 : f32
    %9 = vector.broadcast %cst_5 : f32 to vector<16x32xf32>
    %10 = arith.addf %9, %8 : vector<16x32xf32>
    %11 = arith.divf %9, %10 : vector<16x32xf32>
    %12 = arith.mulf %6, %11 : vector<16x32xf32>
    %13 = arith.truncf %12 : vector<16x32xf32> to vector<16x32xbf16>
    %c0_6 = arith.constant 0 : index
    %c0_7 = arith.constant 0 : index
    %14 = vector.load %arg4[%c0_6, %c0_7] : memref<32x32xbf16, #tpu.memory_space<vmem>>, vector<32x32xbf16>
    %cst_8 = arith.constant dense<0.000000e+00> : vector<16x32xf32>
    %15 = tpu.matmul %13, %14, %cst_8 {dimension_numbers = #tpu.dot_dimension_numbers<[1], [0], [0], [1], [0, 0, 1, 1], [], []>} : vector<16x32xbf16>, vector<32x32xbf16>, vector<16x32xf32> -> vector<16x32xf32>
    %c0_9 = arith.constant 0 : index
    %c0_10 = arith.constant 0 : index
    %16 = vector.load %arg5[%c0_9, %c0_10] : memref<1x32xf32, #tpu.memory_space<vmem>>, vector<1x32xf32>
    %17 = vector.broadcast %16 : vector<1x32xf32> to vector<16x32xf32>
    %18 = arith.addf %15, %17 : vector<16x32xf32>
    %19 = arith.negf %18 : vector<16x32xf32>
    %20 = math.exp %19 : vector<16x32xf32>
    %cst_11 = arith.constant 1.000000e+00 : f32
    %21 = vector.broadcast %cst_11 : f32 to vector<16x32xf32>
    %22 = arith.addf %21, %20 : vector<16x32xf32>
    %23 = arith.divf %21, %22 : vector<16x32xf32>
    %24 = arith.mulf %18, %23 : vector<16x32xf32>
    %25 = arith.truncf %24 : vector<16x32xf32> to vector<16x32xbf16>
    %c0_12 = arith.constant 0 : index
    %c0_13 = arith.constant 0 : index
    %26 = vector.load %arg6[%c0_12, %c0_13] : memref<32x48xbf16, #tpu.memory_space<vmem>>, vector<32x48xbf16>
    %cst_14 = arith.constant dense<0.000000e+00> : vector<16x48xf32>
    %27 = tpu.matmul %25, %26, %cst_14 {dimension_numbers = #tpu.dot_dimension_numbers<[1], [0], [0], [1], [0, 0, 1, 1], [], []>} : vector<16x32xbf16>, vector<32x48xbf16>, vector<16x48xf32> -> vector<16x48xf32>
    %c0_15 = arith.constant 0 : index
    %c0_16 = arith.constant 0 : index
    %28 = vector.load %arg7[%c0_15, %c0_16] : memref<1x48xf32, #tpu.memory_space<vmem>>, vector<1x48xf32>
    %29 = vector.broadcast %28 : vector<1x48xf32> to vector<16x48xf32>
    %30 = arith.addf %27, %29 : vector<16x48xf32>
    %cst_17 = arith.constant -1.000000e+00 : f32
    %cst_18 = arith.constant 1.000000e+00 : f32
    %31 = vector.broadcast %cst_17 : f32 to vector<16x48xf32>
    %32 = arith.maximumf %31, %30 : vector<16x48xf32>
    %33 = vector.broadcast %cst_18 : f32 to vector<16x48xf32>
    %34 = arith.minimumf %33, %32 : vector<16x48xf32>
    %c0_19 = arith.constant 0 : index
    %c0_20 = arith.constant 0 : index
    %35 = vector.load %arg8[%c0_19, %c0_20] : memref<16x48xf32, #tpu.memory_space<vmem>>, vector<16x48xf32>
    tpu.vector_store %arg8[%c0_19, %c0_20], %34 {strides = array<i32>} : memref<16x48xf32, #tpu.memory_space<vmem>>, vector<16x48xf32>,
    return
  }
  func.func @transform_0(%arg0: i32) -> (i32, i32) {
    %c0_i32 = arith.constant 0 : i32
    %c0_i32_0 = arith.constant 0 : i32
    return %arg0, %c0_i32 : i32, i32
  }
  func.func @transform_1(%arg0: i32) -> (i32, i32) {
    %c0_i32 = arith.constant 0 : i32
    %c0_i32_0 = arith.constant 0 : i32
    %c0_i32_1 = arith.constant 0 : i32
    return %c0_i32, %c0_i32_0 : i32, i32
  }
  func.func @transform_2(%arg0: i32) -> (i32, i32) {
    %c0_i32 = arith.constant 0 : i32
    %c0_i32_0 = arith.constant 0 : i32
    %c0_i32_1 = arith.constant 0 : i32
    return %c0_i32, %c0_i32_0 : i32, i32
  }
  func.func @transform_3(%arg0: i32) -> (i32, i32) {
    %c0_i32 = arith.constant 0 : i32
    %c0_i32_0 = arith.constant 0 : i32
    %c0_i32_1 = arith.constant 0 : i32
    return %c0_i32, %c0_i32_0 : i32, i32
  }
  func.func @transform_4(%arg0: i32) -> (i32, i32) {
    %c0_i32 = arith.constant 0 : i32
    %c0_i32_0 = arith.constant 0 : i32
    %c0_i32_1 = arith.constant 0 : i32
    return %c0_i32, %c0_i32_0 : i32, i32
  }
  func.func @transform_5(%arg0: i32) -> (i32, i32) {
    %c0_i32 = arith.constant 0 : i32
    %c0_i32_0 = arith.constant 0 : i32
    %c0_i32_1 = arith.constant 0 : i32
    return %c0_i32, %c0_i32_0 : i32, i32
  }
  func.func @transform_6(%arg0: i32) -> (i32, i32) {
    %c0_i32 = arith.constant 0 : i32
    %c0_i32_0 = arith.constant 0 : i32
    %c0_i32_1 = arith.constant 0 : i32
    return %c0_i32, %c0_i32_0 : i32, i32
  }
  func.func @transform_7(%arg0: i32) -> (i32, i32) {
    %c0_i32 = arith.constant 0 : i32
    %c0_i32_0 = arith.constant 0 : i32
    return %arg0, %c0_i32 : i32, i32
  }
}

</mosaic_0001>

<bundles_post_ra>
// kernel: osediff_gen_forward.5
= control target key start
LH: loop header
LB: loop body
LE: loop exit
PB: predicated region body
PF: predicated region fallthrough
CT: control target
= control target key end

     0   :  { %vm44_vm0 = vcmask 261120   ;;  %s186_s1 = inlined_call_operand.vmem [shape: bf16[32,32], index: 1, kind: input, shape index: {}]   ;;  %s187_s0 = inlined_call_operand.vmem [shape: f32[32,32], index: 0, kind: input, shape index: {}]   ;;  %s188_s2 = inlined_call_operand.vmem [shape: f32[1,32], index: 2, kind: input, shape index: {}]   ;;  %s189_s3 = inlined_call_operand.vmem [shape: f32[32,32], index: 3, kind: output, shape index: {}]  }
   0x1   :  { %v125_v0 = vld [vmem:[%s186_s1 + $0x8] sm:$0xff]   ;;  %v126_v1 = vld [vmem:[%s186_s1] sm:$0xff]   ;;  %v17_v5 = vld [vmem:[%s187_s0 + $0x10] sm:$0xff] }
   0x2   :  { %117 = vmatprep.subr.bf16.mxu0 %v125_v0  ;;  %v15_v2 = vld [vmem:[%s187_s0] sm:$0xff]  ;;  %v16_v3 = vld [vmem:[%s187_s0 + $0x8] sm:$0xff]  ;;  %v18_v6 = vld [vmem:[%s187_s0 + $0x18] sm:$0xff] }
   0x3   :  { %118 = vmatpush3.bf16.msra.mxu0 %v125_v0  ;;  %v19_v4 = vpack.c.bf16 %v16_v3, %v15_v2  ;;  %v20_v7 = vpack.c.bf16 %v18_v6, %v17_v5  ;;  %v108_v8 = vld [vmem:[%s188_s2] ss:$0 sm:$0xff] }
   0x4   :  { %119 = vmatprep.subr.bf16.mxu0 %v126_v1 }
   0x5   :  { %121 = vmatprep.mubr.msk.bf16.mxu0 %vm44_vm0, %v19_v4 }
   0x7   :  { %120 = vmatpush3.bf16.msra.mxu0 %v126_v1 }
   0xa   :  { %122 = vmatmul.mubr.msk.bf16.vlgmr.msra.gmra.mxu0 %vm44_vm0, %v20_v7 }
  0xca   :  { %v123_v9 = vpop.f32.mrf.mxu0 }
  0xcb   :  { %v94_v10 = vadd.f32 %v123_v9, %v108_v8 }
  0xcc   :  { %v85_v11 = vpop.f32.mrf.mxu0 }
  0xcd   :  { %102 = vst.msk [vmem:[%s189_s3 + $0x10] sm:$0xff] %vm44_vm0, %v94_v10  ;;  %v86_v12 = vadd.f32 %v108_v8, %v85_v11 }
  0xce   :  { %v124_v13 = vpop.f32.mrf.mxu0 }
  0xcf   :  { %100 = vst.msk [vmem:[%s189_s3] sm:$0xff] %vm44_vm0, %v86_v12  ;;  %v97_v14 = vadd.f32 %v124_v13, %v108_v8 }
  0xd0   :  { %v88_v15 = vpop.f32.mrf.mxu0 }
  0xd1   :  { %103 = vst.msk [vmem:[%s189_s3 + $0x18] sm:$0xff] %vm44_vm0, %v97_v14  ;;  %v89_v16 = vadd.f32 %v108_v8, %v88_v15 }
  0xd3   :  { %101 = vst.msk [vmem:[%s189_s3 + $0x8] sm:$0xff] %vm44_vm0, %v89_v16 }

// kernel: osediff_gen_forward.4
= control target key start
LH: loop header
LB: loop body
LE: loop exit
PB: predicated region body
PF: predicated region fallthrough
CT: control target
= control target key end

     0   :  { %s968_s13 = smov 0   ;;  %s1039_s0 = inlined_call_operand.vmem [shape: f32[32,48], index: 0, kind: input, shape index: {}]   ;;  %s1040_s1 = inlined_call_operand.vmem [shape: f32[32,4], index: 1, kind: input, shape index: {}]   ;;  %s1041_s2 = inlined_call_operand.vmem [shape: bf16[48,32], index: 2, kind: input, shape index: {}]   ;;  %s1042_s3 = inlined_call_operand.vmem [shape: f32[1,32], index: 3, kind: input, shape index: {}]   ;;  %s1043_s4 = inlined_call_operand.vmem [shape: bf16[32,32], index: 4, kind: input, shape index: {}]   ;;  %s1044_s5 = inlined_call_operand.vmem [shape: f32[1,32], index: 5, kind: input, shape index: {}]   ;;  %s1045_s6 = inlined_call_operand.vmem [shape: bf16[32,4], index: 6, kind: input, shape index: {}]   ;;  %s1046_s7 = inlined_call_operand.vmem [shape: f32[1,4], index: 7, kind: input, shape index: {}]   ;;  %s1047_s8 = inlined_call_operand.vmem [shape: bf16[32,4], index: 8, kind: input, shape index: {}]   ;;  %s1048_s9 = inlined_call_operand.vmem [shape: f32[1,4], index: 9, kind: input, shape index: {}]   ;;  %s1049_s10 = inlined_call_operand.vmem [shape: f32[32,4], index: 10, kind: output, shape index: {}]  }
   0x1 LB: > { %s783_s14 = sadd.s32 4294967295, %s909_s13   ;;  %p787_p0 = scmp.ge.s32.totalorder %s909_s13, 1  ;;  %s909_s13 = sphi %s968_s13, %s20_s13  }
   0x2   : > { %p324_p1 = scmp.lt.s32.totalorder %s909_s13, 3 }
   0x4   : > { %p325_p2 = pnand %p787_p0, %p324_p1 }
   0x5   : > { %s788_s19 = sshll.u32 (!%p325_p2), %s783_s14, 1 }
   0x6   : > { %328 = sbr.rel (%p325_p2) target bundleno = 722 (0x2d2), region = 60  ;;  %p368_p3 = scmp.lt.s32.totalorder (!%p325_p2), %s788_s19, 3 }
   0xb   : > { %v874_v0 = vld [vmem:[%s1041_s2 + $0x10] sm:$0xff]   ;;  %v911_v1 = vmov 0.0   ;;  %v875_v2 = vld [vmem:[%s1041_s2 + $0x8] sm:$0xff]   ;;  %vm912_vm0 = vmmov 0   ;;  %v876_v3 = vld [vmem:[%s1041_s2] sm:$0xff]   ;;  %s1051_s19 = smov (!%p368_p3, %s788_s19), 3 }
   0xc   : > { %830 = vmatprep.subr.bf16.mxu0 %v911_v1  ;;  %840 = vmatprep.subr.bf16.mxu1 %v911_v1  ;;  %s987_s22 = sshll.u32 %s1051_s19, 3  ;;  %vm420_vm1 = vcmask 392192   ;;  %v877_v7 = vld [vmem:[%s1043_s4 + $0x8] sm:$0xff]   ;;  %v878_v8 = vld [vmem:[%s1043_s4] sm:$0xff]   ;;  %vm503_vm2 = vcmask 261120   ;;  %vm712_vm3 = vcmask 31744  }
   0xd   : > { %831 = vmatpush3.bf16.msra.mxu0 %v874_v0  ;;  %836 = vmatprep.mubr.msk.bf16.mxu0 %vm912_vm0, %v911_v1  ;;  %s371_s25 = scalar_lea.vmem %s1039_s0, %s987_s22  ;;  %v794_v9 = vld [vmem:[%s1042_s3] ss:$0 sm:$0xff]  ;;  %v879_v27 = vld [vmem:[%s1047_s8 + $0x8] sm:$0xff]   ;;  %s377_s28 = scalar_lea.vmem %s1040_s1, %s987_s22 }
   0xe   : > { %832 = vmatprep.subr.bf16.mxu0 %v911_v1  ;;  %844 = vmatprep.mubr.msk.bf16.mxu1 %vm912_vm0, %v911_v1  ;;  %v386_v4 = vld [vmem:[%s371_s25] sm:$0xff]  ;;  %v387_v5 = vld [vmem:[%s371_s25 + $0x8] sm:$0xff]  ;;  %s383_s14 = scalar_lea.vmem %s1049_s10, %s987_s22 }
   0xf   : > { %v388_v6 = vpack.c.bf16 %v387_v5, %v386_v4  ;;  %841 = vmatpush3.bf16.msra.mxu1 %v877_v7  ;;  %v880_v28 = vld [vmem:[%s1045_s6 + $0x8] sm:$0xff]   ;;  %v881_v29 = vld [vmem:[%s1047_s8] sm:$0xff]  }
  0x10   : > { %842 = vmatprep.subr.bf16.mxu1 %v911_v1  ;;  %v882_v30 = vld [vmem:[%s1045_s6] sm:$0xff]  }
  0x11   : > { %833 = vmatpush3.bf16.msra.mxu0 %v875_v2  ;;  %v801_v31 = vld [vmem:[%s1044_s5] ss:$0 sm:$0xff] }
  0x12   : > { %834 = vmatprep.subr.bf16.mxu0 %v911_v1  ;;  %v811_v49 = vld [vmem:[%s1048_s9] ss:$0 sm:$0xff] }
  0x13   : > { %843 = vmatpush3.bf16.msra.mxu1 %v878_v8  ;;  %v704_v4 = vld [vmem:[%s377_s28] sm:$0xff] }
  0x14   : > { %848 = vmatprep.subr.bf16.mxu1 %v911_v1  ;;  %v807_v5 = vld [vmem:[%s1046_s7] ss:$0 sm:$0xff] }
  0x15   : > { %835 = vmatpush3.bf16.msra.mxu0 %v876_v3 }
  0x16   : > { %856 = vmatprep.subr.bf16.mxu0 %v911_v1 }
  0x18   : > { %837 = vmatmul.mubr.msk.bf16.vlgmr.msra.gmra.mxu0 %vm420_vm1, %v388_v6 }
  0x19   : > { %860 = vmatprep.mubr.msk.bf16.mxu0 %vm912_vm0, %v911_v1  ;;  %857 = vmatpush3.bf16.msra.mxu0 %v879_v27 }
  0x1a   : > { %858 = vmatprep.subr.bf16.mxu0 %v911_v1 }
  0x1d   : > { %859 = vmatpush3.bf16.msra.mxu0 %v881_v29 }
  0xd8   : > { %v458_v10 = vpop.f32.mrf.mxu0 }
  0xd9   : > { %v459_v11 = vadd.f32 %v794_v9, %v458_v10 }
  0xda   : > { %v838_v12 = vpop.f32.mrf.mxu0 }
  0xdb   : > { %v799_v13 = vmul.f32 -1.442695, %v459_v11 }
  0xdc   : > { %v461_v14 = vpop.f32.mrf.mxu0 }
  0xdd   : > { %883 = vpow2.f32 %v799_v13  ;;  %v462_v15 = vadd.f32 %v794_v9, %v461_v14  ;;  %v705_v9 = vld [vmem:[%s377_s28 + $0x8] sm:$0xff] }
  0xde   : > { %v839_v16 = vpop.f32.mrf.mxu0 }
  0xdf   : > { %v800_v17 = vmul.f32 -1.442695, %v462_v15 }
  0xe1   : > { %885 = vpow2.f32 %v800_v17 }
  0xea   : > { %v884_v18 = vpop.eup %883 }
  0xeb   : > { %v471_v19 = vadd.f32 1.0, %v884_v18 }
  0xed   : > { %887 = vrcp.f32 %v471_v19 }
  0xee   : > { %v886_v20 = vpop.eup %885 }
  0xef   : > { %v472_v21 = vadd.f32 1.0, %v886_v20 }
  0xf1   : > { %889 = vrcp.f32 %v472_v21 }
  0xfa   : > { %v888_v22 = vpop.eup %887 }
  0xfb   : > { %v477_v24 = vmul.f32 %v888_v22, %v459_v11 }
  0xfe   : > { %v890_v23 = vpop.eup %889 }
  0xff   : > { %v478_v25 = vmul.f32 %v890_v23, %v462_v15 }
 0x101   : > { %v479_v26 = vpack.c.bf16 %v478_v25, %v477_v24 }
 0x103   : > { %845 = vmatmul.mubr.msk.bf16.vlgmr.msra.gmra.mxu1 %vm503_vm2, %v479_v26 }
 0x104   : > { %852 = vmatprep.mubr.msk.bf16.mxu1 %vm912_vm0, %v911_v1  ;;  %849 = vmatpush3.bf16.msra.mxu1 %v880_v28 }
 0x105   : > { %850 = vmatprep.subr.bf16.mxu1 %v911_v1 }
 0x108   : > { %851 = vmatpush3.bf16.msra.mxu1 %v882_v30 }
 0x1c3   : > { %v541_v32 = vpop.f32.mrf.mxu1 }
 0x1c4   : > { %v542_v33 = vadd.f32 %v801_v31, %v541_v32 }
 0x1c5   : > { %v846_v34 = vpop.f32.mrf.mxu1 }
 0x1c6   : > { %v805_v35 = vmul.f32 -1.442695, %v542_v33 }
 0x1c7   : > { %v544_v36 = vpop.f32.mrf.mxu1 }
 0x1c8   : > { %891 = vpow2.f32 %v805_v35  ;;  %v545_v37 = vadd.f32 %v801_v31, %v544_v36 }
 0x1c9   : > { %v847_v38 = vpop.f32.mrf.mxu1 }
 0x1ca   : > { %v806_v39 = vmul.f32 -1.442695, %v545_v37 }
 0x1cc   : > { %893 = vpow2.f32 %v806_v39 }
 0x1d5   : > { %v892_v40 = vpop.eup %891 }
 0x1d6   : > { %v554_v41 = vadd.f32 1.0, %v892_v40 }
 0x1d8   : > { %895 = vrcp.f32 %v554_v41 }
 0x1d9   : > { %v894_v42 = vpop.eup %893 }
 0x1da   : > { %v555_v43 = vadd.f32 1.0, %v894_v42 }
 0x1dc   : > { %897 = vrcp.f32 %v555_v43 }
 0x1e5   : > { %v896_v44 = vpop.eup %895 }
 0x1e6   : > { %v560_v46 = vmul.f32 %v896_v44, %v542_v33 }
 0x1e9   : > { %v898_v45 = vpop.eup %897 }
 0x1ea   : > { %v561_v47 = vmul.f32 %v898_v45, %v545_v37 }
 0x1ec   : > { %v562_v48 = vpack.c.bf16 %v561_v47, %v560_v46 }
 0x1ee   : > { %853 = vmatmul.mubr.msk.bf16.vlgmr.msra.gmra.mxu1 %vm503_vm2, %v562_v48  ;;  %861 = vmatmul.mubr.msk.bf16.vlgmr.msra.gmra.mxu0 %vm503_vm2, %v562_v48 }
 0x2ae   : > { %v623_v50 = vpop.f32.mrf.mxu1  ;;  %v687_v51 = vpop.f32.mrf.mxu0 }
 0x2af   : > { %v688_v52 = vadd.f32 %v811_v49, %v687_v51  ;;  %v624_v7 = vadd.f32 %v807_v5, %v623_v50 }
 0x2b0   : > { %v854_v53 = vpop.f32.mrf.mxu1  ;;  %v862_v54 = vpop.f32.mrf.mxu0 }
 0x2b1   : > { %v694_v55 = vmax.f32 %v688_v52, -30.0 }
 0x2b2   : > { %v626_v56 = vpop.f32.mrf.mxu1  ;;  %v690_v57 = vpop.f32.mrf.mxu0 }
 0x2b3   : > { %v696_v58 = vmin.f32 %v694_v55, 20.0  ;;  %v691_v59 = vadd.f32 %v811_v49, %v690_v57  ;;  %v627_v13 = vadd.f32 %v807_v5, %v626_v56 }
 0x2b4   : > { %v855_v60 = vpop.f32.mrf.mxu1  ;;  %v863_v61 = vpop.f32.mrf.mxu0 }
 0x2b5   : > { %v698_v62 = vmul.f32 0.5, %v696_v58  ;;  %v695_v63 = vmax.f32 %v691_v59, -30.0 }
 0x2b7   : > { %v700_v0 = vmul.f32 1.442695, %v698_v62  ;;  %v697_v1 = vmin.f32 %v695_v63, 20.0 }
 0x2b9   : > { %899 = vpow2.f32 %v700_v0  ;;  %v699_v2 = vmul.f32 0.5, %v697_v1 }
 0x2bb   : > { %v702_v3 = vmul.f32 1.442695, %v699_v2 }
 0x2bd   : > { %901 = vpow2.f32 %v702_v3 }
 0x2c6   : > { %v900_v6 = vpop.eup %899 }
 0x2c7   : > { %v706_v8 = vmul.f32 %v900_v6, %v704_v4 }
 0x2c9   : > { %v708_v10 = vadd.f32 %v706_v8, %v624_v7 }
 0x2ca   : > { %v902_v11 = vpop.eup %901 }
 0x2cb   : > { %v710_v12 = vmul.f32 0.18215, %v708_v10  ;;  %v707_v14 = vmul.f32 %v902_v11, %v705_v9 }
 0x2cd   : > { %713 = vst.msk [vmem:[%s383_s14] sm:$0xff] %vm712_vm3, %v710_v12  ;;  %v709_v15 = vadd.f32 %v707_v14, %v627_v13 }
 0x2cf   : > { %v711_v16 = vmul.f32 0.18215, %v709_v15 }
 0x2d1   : > { %714 = vst.msk [vmem:[%s383_s14 + $0x8] sm:$0xff] %vm712_vm3, %v711_v16 }
 0x2d2 PF: > { %s20_s13 = sadd.s32 1, %s909_s13  }
 0x2d3   : > { %p17_p4 = scmp.ge.s32.totalorder %s20_s13, 4  }
 0x2d5   :  { %19 = sbr.rel (!%p17_p4) target bundleno = 1 (0x1), region = 93 }

// kernel: osediff_gen_forward.7
= control target key start
LH: loop header
LB: loop body
LE: loop exit
PB: predicated region body
PF: predicated region fallthrough
CT: control target
= control target key end

     0   :  { %s708_s24 = smov 0   ;;  %s758_s0 = inlined_call_operand.vmem [shape: f32[32,4], index: 0, kind: input, shape index: {}]   ;;  %s759_s1 = inlined_call_operand.vmem [shape: bf16[4,32], index: 1, kind: input, shape index: {}]   ;;  %s760_s2 = inlined_call_operand.vmem [shape: f32[1,32], index: 2, kind: input, shape index: {}]   ;;  %s761_s3 = inlined_call_operand.vmem [shape: bf16[32,32], index: 3, kind: input, shape index: {}]   ;;  %s762_s4 = inlined_call_operand.vmem [shape: f32[1,32], index: 4, kind: input, shape index: {}]   ;;  %s763_s5 = inlined_call_operand.vmem [shape: bf16[32,48], index: 5, kind: input, shape index: {}]   ;;  %s764_s6 = inlined_call_operand.vmem [shape: f32[1,48], index: 6, kind: input, shape index: {}]   ;;  %s765_s7 = inlined_call_operand.vmem [shape: f32[32,48], index: 7, kind: output, shape index: {}]  }
   0x1 LB: > { %s571_s25 = sadd.s32 4294967295, %s664_s24   ;;  %p575_p0 = scmp.ge.s32.totalorder %s664_s24, 1  ;;  %s664_s24 = sphi %s708_s24, %s17_s24  }
   0x2   : > { %p238_p1 = scmp.lt.s32.totalorder %s664_s24, 3 }
   0x4   : > { %p239_p2 = pnand %p575_p0, %p238_p1 }
   0x5   : > { %s576_s28 = sshll.u32 (!%p239_p2), %s571_s25, 1 }
   0x6   : > { %242 = sbr.rel (%p239_p2) target bundleno = 689 (0x2b1), region = 48  ;;  %p271_p3 = scmp.lt.s32.totalorder (!%p239_p2), %s576_s28, 3 }
   0xb   : > { %v286_v0 = vld [vmem:[%s759_s1] sm:$0x3]  ;;  %vm298_vm0 = vcmask 1041408   ;;  %v666_v1 = vmov 0.0   ;;  %vm667_vm1 = vmmov 0   ;;  %s767_s28 = smov (!%p271_p3, %s576_s28), 3 }
   0xc   : > { %606 = vmatprep.subr.bf16.mxu0 %v666_v1  ;;  %v300_v2 = vsel %vm298_vm0, %v286_v0, 0  ;;  %608 = vmatprep.mubr.msk.bf16.mxu0 %vm667_vm1, %v666_v1  ;;  %s577_s29 = sshll.u32 %s767_s28, 3  ;;  %vm294_vm2 = vcmask 31744   ;;  %v638_v6 = vld [vmem:[%s761_s3 + $0x8] sm:$0xff]   ;;  %v639_v7 = vld [vmem:[%s761_s3] sm:$0xff]   ;;  %vm381_vm3 = vcmask 261120  }
   0xd   : > { %607 = vmatpush3.bf16.msra.mxu0 %v300_v2  ;;  %612 = vmatprep.subr.bf16.mxu1 %v666_v1  ;;  %s274_s9 = scalar_lea.vmem %s758_s0, %s577_s29  ;;  %v580_v8 = vld [vmem:[%s760_s2] ss:$0 sm:$0xff]  ;;  %v640_v26 = vld [vmem:[%s763_s5 + $0x8] sm:$0xff]   ;;  %s280_s27 = scalar_lea.vmem %s765_s7, %s577_s29  ;;  %vm512_vm4 = vcmask 392192  }
   0xe   : > { %616 = vmatprep.mubr.msk.bf16.mxu1 %vm667_vm1, %v666_v1  ;;  %620 = vmatprep.subr.bf16.mxu0 %v666_v1  ;;  %v283_v3 = vld [vmem:[%s274_s9] sm:$0xff]  ;;  %v284_v4 = vld [vmem:[%s274_s9 + $0x8] sm:$0xff] }
   0xf   : > { %v285_v5 = vpack.c.bf16 %v284_v4, %v283_v3  ;;  %613 = vmatpush3.bf16.msra.mxu1 %v638_v6  ;;  %v641_v27 = vld [vmem:[%s763_s5] sm:$0xff]  }
  0x10   : > { %614 = vmatprep.subr.bf16.mxu1 %v666_v1  ;;  %v584_v28 = vld [vmem:[%s762_s4] ss:$0 sm:$0xff] }
  0x11   : > { %609 = vmatmul.mubr.msk.bf16.vlgmr.msra.gmra.mxu0 %vm294_vm2, %v285_v5  ;;  %v590_v46 = vld [vmem:[%s764_s6] ss:$0 sm:$0xff] }
  0x12   : > { %624 = vmatprep.mubr.msk.bf16.mxu0 %vm667_vm1, %v666_v1  ;;  %621 = vmatpush3.bf16.msra.mxu0 %v640_v26 }
  0x13   : > { %615 = vmatpush3.bf16.msra.mxu1 %v639_v7  ;;  %622 = vmatprep.subr.bf16.mxu0 %v666_v1 }
  0x16   : > { %623 = vmatpush3.bf16.msra.mxu0 %v641_v27 }
  0xd1   : > { %v336_v9 = vpop.f32.mrf.mxu0 }
  0xd2   : > { %v337_v10 = vadd.f32 %v580_v8, %v336_v9 }
  0xd3   : > { %v610_v11 = vpop.f32.mrf.mxu0 }
  0xd4   : > { %v582_v12 = vmul.f32 -1.442695, %v337_v10 }
  0xd5   : > { %v339_v13 = vpop.f32.mrf.mxu0 }
  0xd6   : > { %642 = vpow2.f32 %v582_v12  ;;  %v340_v14 = vadd.f32 %v580_v8, %v339_v13 }
  0xd7   : > { %v611_v15 = vpop.f32.mrf.mxu0 }
  0xd8   : > { %v583_v16 = vmul.f32 -1.442695, %v340_v14 }
  0xda   : > { %644 = vpow2.f32 %v583_v16 }
  0xe3   : > { %v643_v17 = vpop.eup %642 }
  0xe4   : > { %v349_v18 = vadd.f32 1.0, %v643_v17 }
  0xe6   : > { %646 = vrcp.f32 %v349_v18 }
  0xe7   : > { %v645_v19 = vpop.eup %644 }
  0xe8   : > { %v350_v20 = vadd.f32 1.0, %v645_v19 }
  0xea   : > { %648 = vrcp.f32 %v350_v20 }
  0xf3   : > { %v647_v21 = vpop.eup %646 }
  0xf4   : > { %v355_v23 = vmul.f32 %v647_v21, %v337_v10 }
  0xf7   : > { %v649_v22 = vpop.eup %648 }
  0xf8   : > { %v356_v24 = vmul.f32 %v649_v22, %v340_v14 }
  0xfa   : > { %v357_v25 = vpack.c.bf16 %v356_v24, %v355_v23 }
  0xfc   : > { %617 = vmatmul.mubr.msk.bf16.vlgmr.msra.gmra.mxu1 %vm381_vm3, %v357_v25 }
 0x1bc   : > { %v419_v29 = vpop.f32.mrf.mxu1 }
 0x1bd   : > { %v420_v30 = vadd.f32 %v584_v28, %v419_v29 }
 0x1be   : > { %v618_v31 = vpop.f32.mrf.mxu1 }
 0x1bf   : > { %v588_v32 = vmul.f32 -1.442695, %v420_v30 }
 0x1c0   : > { %v422_v33 = vpop.f32.mrf.mxu1 }
 0x1c1   : > { %650 = vpow2.f32 %v588_v32  ;;  %v423_v34 = vadd.f32 %v584_v28, %v422_v33 }
 0x1c2   : > { %v619_v35 = vpop.f32.mrf.mxu1 }
 0x1c3   : > { %v589_v36 = vmul.f32 -1.442695, %v423_v34 }
 0x1c5   : > { %652 = vpow2.f32 %v589_v36 }
 0x1ce   : > { %v651_v37 = vpop.eup %650 }
 0x1cf   : > { %v432_v38 = vadd.f32 1.0, %v651_v37 }
 0x1d1   : > { %654 = vrcp.f32 %v432_v38 }
 0x1d2   : > { %v653_v39 = vpop.eup %652 }
 0x1d3   : > { %v433_v40 = vadd.f32 1.0, %v653_v39 }
 0x1d5   : > { %656 = vrcp.f32 %v433_v40 }
 0x1de   : > { %v655_v41 = vpop.eup %654 }
 0x1df   : > { %v438_v43 = vmul.f32 %v655_v41, %v420_v30 }
 0x1e2   : > { %v657_v42 = vpop.eup %656 }
 0x1e3   : > { %v439_v44 = vmul.f32 %v657_v42, %v423_v34 }
 0x1e5   : > { %v440_v45 = vpack.c.bf16 %v439_v44, %v438_v43 }
 0x1e7   : > { %625 = vmatmul.mubr.msk.bf16.vlgmr.msra.gmra.mxu0 %vm381_vm3, %v440_v45 }
 0x2a7   : > { %v501_v47 = vpop.f32.mrf.mxu0 }
 0x2a8   : > { %v502_v48 = vadd.f32 %v590_v46, %v501_v47 }
 0x2a9   : > { %v626_v49 = vpop.f32.mrf.mxu0 }
 0x2aa   : > { %v594_v50 = vclamps-f32 %v502_v48, 1.0 }
 0x2ab   : > { %v504_v51 = vpop.f32.mrf.mxu0 }
 0x2ac   : > { %513 = vst.msk [vmem:[%s280_s27] sm:$0xff] %vm512_vm4, %v594_v50  ;;  %v505_v52 = vadd.f32 %v590_v46, %v504_v51 }
 0x2ad   : > { %v627_v53 = vpop.f32.mrf.mxu0 }
 0x2ae   : > { %v595_v54 = vclamps-f32 %v505_v52, 1.0 }
 0x2b0   : > { %514 = vst.msk [vmem:[%s280_s27 + $0x8] sm:$0xff] %vm512_vm4, %v595_v54 }
 0x2b1 PF: > { %s17_s24 = sadd.s32 1, %s664_s24  }
 0x2b2   : > { %p14_p4 = scmp.ge.s32.totalorder %s17_s24, 4  }
 0x2b4   :  { %16 = sbr.rel (!%p14_p4) target bundleno = 1 (0x1), region = 78 }

// kernel: osediff_gen_forward.6
= control target key start
LH: loop header
LB: loop body
LE: loop exit
PB: predicated region body
PF: predicated region fallthrough
CT: control target
= control target key end

     0   :  { %v960_v0 = vmov 0.0   ;;  %vm961_vm0 = vmmov 0   ;;  %vm72_vm1 = vcmask 1041408   ;;  %vm65_vm2 = vcmask 31744   ;;  %s1212_s5 = inlined_call_operand.vmem [shape: bf16[32,32], index: 5, kind: input, shape index: {}]   ;;  %s1213_s1 = inlined_call_operand.vmem [shape: f32[1,32], index: 1, kind: input, shape index: {}]   ;;  %s1214_s3 = inlined_call_operand.vmem [shape: bf16[4,32], index: 3, kind: input, shape index: {}]   ;;  %s1215_s0 = inlined_call_operand.vmem [shape: f32[32,4], index: 0, kind: input, shape index: {}]   ;;  %s1216_s9 = inlined_call_operand.vmem [shape: bf16[32,64], index: 9, kind: input, shape index: {}]   ;;  %s1217_s7 = inlined_call_operand.vmem [shape: bf16[32,32], index: 7, kind: input, shape index: {}]   ;;  %s1218_s2 = inlined_call_operand.vmem [shape: bf16[16,32], index: 2, kind: input, shape index: {}]   ;;  %s1219_s6 = inlined_call_operand.vmem [shape: f32[1,32], index: 6, kind: input, shape index: {}]   ;;  %s1220_s4 = inlined_call_operand.vmem [shape: f32[1,32], index: 4, kind: input, shape index: {}]   ;;  %s1221_s10 = inlined_call_operand.vmem [shape: f32[1,64], index: 10, kind: input, shape index: {}]   ;;  %s1222_s8 = inlined_call_operand.vmem [shape: f32[1,32], index: 8, kind: input, shape index: {}]   ;;  %s1223_s11 = inlined_call_operand.vmem [shape: bf16[32,32], index: 11, kind: input, shape index: {}]   ;;  %s1224_s13 = inlined_call_operand.vmem [shape: bf16[32,4], index: 13, kind: input, shape index: {}]   ;;  %s1225_s12 = inlined_call_operand.vmem [shape: f32[1,32], index: 12, kind: input, shape index: {}]   ;;  %s1226_s14 = inlined_call_operand.vmem [shape: f32[1,4], index: 14, kind: input, shape index: {}]   ;;  %s1227_s15 = inlined_call_operand.vmem [shape: f32[32,4], index: 15, kind: output, shape index: {}]  }
   0x1   :  { %861 = vmatprep.subr.bf16.mxu1 %v960_v0  ;;  %v929_v1 = vld [vmem:[%s1212_s5 + $0x8] sm:$0xff]   ;;  %865 = vmatprep.mubr.msk.bf16.mxu1 %vm961_vm0, %v960_v0  ;;  %v930_v2 = vld [vmem:[%s1212_s5] sm:$0xff]   ;;  %v1072_v8 = vld [vmem:[%s1215_s0 + $0x10] sm:$0xff]  ;;  %vm144_vm3 = vcmask 261120   ;;  %v195_v28 = vlaneseq  ;;  %vm406_vm4 = vcmask 64512   ;;  %vm436_vm5 = vcmask 1043456  }
   0x2   :  { %862 = vmatpush3.bf16.msra.mxu1 %v929_v1  ;;  %v125_v3 = vld [vmem:[%s1213_s1] sm:$0x1]  ;;  %v1067_v7 = vld [vmem:[%s1215_s0 + $0x8] sm:$0xff]  ;;  %v1077_v9 = vld [vmem:[%s1215_s0 + $0x18] sm:$0xff] }
   0x3   :  { %v57_v4 = vld [vmem:[%s1214_s3] sm:$0x3]  ;;  %863 = vmatprep.subr.bf16.mxu1 %v960_v0  ;;  %v56_v11 = vpack.c.bf16 %v1077_v9, %v1072_v8  ;;  %v126_v12 = vpack.c.bf16 %v125_v3, %v125_v3  ;;  %v931_v13 = vld [vmem:[%s1216_s9 + $0x8] sm:$0xff]   ;;  %v196_v30 = vshrl.u32 %v195_v28, 7 }
   0x4   :  { %v1061_v5 = vld [vmem:[%s1215_s0] sm:$0xff]  ;;  %925 = vmatprep.subr.msk.bf16.mxu0 %vm72_vm1, %v57_v4  ;;  %v74_v6 = vsel %vm72_vm1, %v57_v4, 0  ;;  %v933_v15 = vld [vmem:[%s1217_s7 + $0x8] sm:$0xff]  }
   0x5   :  { %856 = vmatpush3.bf16.msra.mxu0 %v74_v6  ;;  %v55_v10 = vpack.c.bf16 %v1067_v7, %v1061_v5  ;;  %v932_v14 = vld [vmem:[%s1216_s9] sm:$0xff]   ;;  %v197_v32 = vsub.s32 0, %v196_v30 }
   0x6   :  { %864 = vmatpush3.bf16.msra.mxu1 %v930_v2  ;;  %v934_v16 = vld [vmem:[%s1218_s2] sm:$0xff]   ;;  %869 = vmatprep.subr.bf16.mxu0 %v933_v15 }
   0x7   :  { %857 = vmatprep.mubr.msk.bf16.mxu0 %vm65_vm2, %v55_v10  ;;  %877 = vmatprep.subr.bf16.mxu1 %v960_v0  ;;  %v935_v17 = vld [vmem:[%s1217_s7] sm:$0xff]  }
   0x8   :  { %858 = vmatmul.mubr.msk.bf16.vlgmr.msra.gmra.mxu0 %vm65_vm2, %v56_v11  ;;  %v131_v18 = vld [vmem:[%s1219_s6] sm:$0x1] }
   0x9   :  { %866 = vmatmul.mubr.msk.bf16.vlgmr.msra.gmra.mxu1 %vm144_vm3, %v126_v12  ;;  %870 = vmatpush3.bf16.msra.mxu0 %v933_v15  ;;  %v795_v33 = vld [vmem:[%s1220_s4] ss:$0 sm:$0xff] }
   0xa   :  { %881 = vmatprep.mubr.msk.bf16.mxu1 %vm961_vm0, %v960_v0  ;;  %878 = vmatpush3.bf16.msra.mxu1 %v931_v13  ;;  %v807_v48 = vld [vmem:[%s1221_s10] ss:$0 sm:$0xff] }
   0xb   :  { %879 = vmatprep.subr.bf16.mxu1 %v960_v0  ;;  %871 = vmatprep.subr.bf16.mxu0 %v935_v17  ;;  %v802_v60 = vld [vmem:[%s1222_s8] ss:$0 sm:$0xff]  ;;  %s962_s8 = smov 96  }
   0xd   :  { %872 = vmatpush3.bf16.msra.mxu0 %v935_v17 }
   0xe   :  { %880 = vmatpush3.bf16.msra.mxu1 %v932_v14  ;;  %885 = vmatprep.subr.bf16.mxu0 %v960_v0 }
   0xf   :  { %891 = vmatprep.subr.bf16.mxu1 %v960_v0 }
  0x11   :  { %882 = vmatmul.mubr.msk.bf16.vlgmr.msra.gmra.mxu1 %vm144_vm3, %v934_v16 }
  0x12   :  { %893 = vmatprep.mubr.msk.bf16.mxu1 %vm961_vm0, %v960_v0 }
  0xc8   :  { %v859_v27 = vpop.f32.mrf.mxu0 }
  0xc9   :  { %v182_v19 = vpop.f32.mrf.mxu1  ;;  %v119_v37 = vadd.f32 %v859_v27, %v795_v33 }
  0xca   :  { %v183_v20 = vadd.f32 %v182_v19, %v131_v18  ;;  %v110_v29 = vpop.f32.mrf.mxu0 }
  0xcb   :  { %v867_v21 = vpop.f32.mrf.mxu1  ;;  %v111_v39 = vadd.f32 %v795_v33, %v110_v29 }
  0xcc   :  { %v801_v22 = vmul.f32 -1.442695, %v183_v20  ;;  %v860_v31 = vpop.f32.mrf.mxu0 }
  0xcd   :  { %v185_v23 = vpop.f32.mrf.mxu1  ;;  %v122_v40 = vadd.f32 %v860_v31, %v795_v33 }
  0xce   :  { %940 = vpow2.f32 %v801_v22  ;;  %v113_v35 = vpop.f32.mrf.mxu0 }
  0xcf   :  { %v868_v24 = vpop.f32.mrf.mxu1  ;;  %v114_v41 = vadd.f32 %v795_v33, %v113_v35 }
  0xd1   :  { %v350_v49 = vpop.f32.mrf.mxu1 }
  0xd2   :  { %v351_v50 = vadd.f32 %v807_v48, %v350_v49 }
  0xd3   :  { %v883_v51 = vpop.f32.mrf.mxu1 }
  0xd4   :  { %v1135_v52 = vpack.c.bf16 %v351_v50, %v351_v50 }
  0xd5   :  { %v353_v53 = vpop.f32.mrf.mxu1 }
  0xd6   :  { %v363_v54 = vsel %vm144_vm3, %v1135_v52, 0  ;;  %v354_v55 = vadd.f32 %v807_v48, %v353_v53 }
  0xd7   :  { %v884_v56 = vpop.f32.mrf.mxu1 }
  0xd8   :  { %v481_v62 = vpack.c.bf16 %v354_v55, %v354_v55 }
  0xda   :  { %v487_v3 = vsel %vm144_vm3, %v481_v62, 0 }
  0xdb   :  { %v941_v25 = vpop.eup %940 }
  0xdc   :  { %v191_v26 = vadd.f32 1.0, %v941_v25 }
  0xde   :  { %942 = vrcp.f32 %v191_v26 }
  0xeb   :  { %v943_v34 = vpop.eup %942 }
  0xec   :  { %v194_v36 = vmul.f32 %v943_v34, %v183_v20 }
  0xee   :  { %v198_v38 = vrot.slane %v194_v36, %v197_v32 }
  0xf0   :  { %v1116_v42 = vadd.f32 %v198_v38, %v119_v37  ;;  %v1118_v43 = vadd.f32 %v198_v38, %v111_v39  ;;  %v1120_v44 = vadd.f32 %v198_v38, %v122_v40  ;;  %v1122_v45 = vadd.f32 %v198_v38, %v114_v41 }
  0xf2   :  { %v204_v46 = vpack.c.bf16 %v1120_v44, %v1116_v42  ;;  %v203_v47 = vpack.c.bf16 %v1122_v45, %v1118_v43 }
  0xf4   :  { %873 = vmatprep.mubr.msk.bf16.mxu0 %vm144_vm3, %v203_v47 }
  0xf5   :  { %874 = vmatmul.mubr.msk.bf16.vlgmr.msra.gmra.mxu0 %vm144_vm3, %v204_v46 }
  0xf6   :  { %887 = vmatprep.mubr.msk.bf16.mxu0 %vm961_vm0, %v960_v0  ;;  %886 = vmatpush3.bf16.xpose.msra.mxu0 %v363_v54 }
  0xf7   :  { %897 = vmatprep.subr.bf16.mxu0 %v960_v0 }
 0x1b5   :  { %v875_v57 = vpop.f32.mrf.mxu0 }
 0x1b6   :  { %v277_v6 = vadd.f32 %v875_v57, %v802_v60 }
 0x1b7   :  { %v268_v58 = vpop.f32.mrf.mxu0 }
 0x1b8   :  { %v269_v63 = vadd.f32 %v802_v60, %v268_v58 }
 0x1b9   :  { %v876_v59 = vpop.f32.mrf.mxu0 }
 0x1ba   :  { %v280_v4 = vadd.f32 %v876_v59, %v802_v60 }
 0x1bb   :  { %v271_v61 = vpop.f32.mrf.mxu0 }
 0x1bc   :  { %v272_v1 = vadd.f32 %v802_v60, %v271_v61  ;;  %v482_v10 = vpack.c.bf16 %v280_v4, %v277_v6 }
 0x1be   :  { %v358_v2 = vpack.c.bf16 %v272_v1, %v269_v63 }
 0x1c0   :  { %888 = vmatmul.mubr.msk.bf16.vlgmr.msra.gmra.mxu0 %vm144_vm3, %v358_v2  ;;  %v936_v2 = vld [vmem:[%s1223_s11 + $0x8] sm:$0xff]  }
 0x1c1   :  { %898 = vmatpush3.bf16.xpose.msra.mxu0 %v487_v3  ;;  %899 = vmatprep.mubr.msk.bf16.mxu0 %vm961_vm0, %v960_v0  ;;  %v937_v3 = vld [vmem:[%s1223_s11] sm:$0xff]  }
 0x1c2   :  { %909 = vmatprep.subr.bf16.mxu0 %v936_v2 }
 0x1c8   :  { %900 = vmatmul.mubr.msk.bf16.vlgmr.msra.gmra.mxu0 %vm144_vm3, %v482_v10 }
 0x1c9   :  { %910 = vmatpush3.bf16.msra.mxu0 %v936_v2 }
 0x1ca   :  { %911 = vmatprep.subr.bf16.mxu0 %v937_v3 }
 0x1cd   :  { %912 = vmatpush3.bf16.msra.mxu0 %v937_v3 }
 0x280   :  { %v399_v11 = vpop.f32.mrf.mxu0 }
 0x281   :  { %v407_v12 = vsel %vm406_vm4, %v399_v11, -inf }
 0x282   :  { %408 = vmax.xlane.f32.xlu0 %v407_v12  ;;  %v889_v13 = vpop.f32.mrf.mxu0 }
 0x284   :  { %v402_v14 = vpop.f32.mrf.mxu0 }
 0x285   :  { %v410_v15 = vsel %vm406_vm4, %v402_v14, -inf }
 0x286   :  { %411 = vmax.xlane.f32.xlu0 %v410_v15  ;;  %v890_v16 = vpop.f32.mrf.mxu0 }
 0x288   :  { %v523_v17 = vpop.f32.mrf.mxu0 }
 0x289   :  { %v530_v18 = vsel %vm406_vm4, %v523_v17, -inf }
 0x28a   :  { %531 = vmax.xlane.f32.xlu1 %v530_v18  ;;  %v901_v19 = vpop.f32.mrf.mxu0  ;;  %v939_v18 = vld [vmem:[%s1224_s13] sm:$0xff]  }
 0x28c   :  { %v526_v20 = vpop.f32.mrf.mxu0 }
 0x28d   :  { %v533_v21 = vsel %vm406_vm4, %v526_v20, -inf }
 0x28e   :  { %534 = vmax.xlane.f32.xlu1 %v533_v21  ;;  %v902_v22 = vpop.f32.mrf.mxu0  ;;  %v816_v21 = vld [vmem:[%s1225_s12] ss:$0 sm:$0xff] }
 0x30b   :  { %v409_v23 = vpop.xlane.xlu0 %408 }
 0x30c   :  { %v413_v24 = vsub.f32 %v399_v11, %v409_v23 }
 0x30e   :  { %v415_v25 = vmul.f32 1.442695, %v413_v24 }
 0x30f   :  { %v412_v26 = vpop.xlane.xlu0 %411 }
 0x310   :  { %944 = vpow2.f32 %v415_v25  ;;  %v414_v27 = vsub.f32 %v402_v14, %v412_v26 }
 0x312   :  { %v417_v28 = vmul.f32 1.442695, %v414_v27 }
 0x313   :  { %v532_v29 = vpop.xlane.xlu1 %531 }
 0x314   :  { %946 = vpow2.f32 %v417_v28  ;;  %v536_v30 = vsub.f32 %v523_v17, %v532_v29  ;;  %v938_v17 = vld [vmem:[%s1224_s13 + $0x8] sm:$0xff]  }
 0x316   :  { %v538_v31 = vmul.f32 1.442695, %v536_v30 }
 0x317   :  { %v535_v32 = vpop.xlane.xlu1 %534 }
 0x318   :  { %948 = vpow2.f32 %v538_v31  ;;  %v537_v33 = vsub.f32 %v526_v20, %v535_v32 }
 0x31a   :  { %v540_v34 = vmul.f32 1.442695, %v537_v33 }
 0x31c   :  { %950 = vpow2.f32 %v540_v34  ;;  %v821_v34 = vld [vmem:[%s1226_s14] ss:$0 sm:$0xff] }
 0x31d   :  { %v945_v35 = vpop.eup %944 }
 0x31e   :  { %v419_v36 = vsel %vm406_vm4, %v945_v35, 0.0 }
 0x31f   :  { %420 = vadd.xlane.f32.xlu0 %v419_v36 }
 0x321   :  { %v947_v37 = vpop.eup %946 }
 0x322   :  { %v422_v38 = vsel %vm406_vm4, %v947_v37, 0.0 }
 0x323   :  { %423 = vadd.xlane.f32.xlu1 %v422_v38 }
 0x325   :  { %v949_v39 = vpop.eup %948 }
 0x326   :  { %v542_v40 = vsel %vm406_vm4, %v949_v39, 0.0 }
 0x327   :  { %543 = vadd.xlane.f32.xlu0 %v542_v40 }
 0x329   :  { %v951_v41 = vpop.eup %950 }
 0x32a   :  { %v545_v46 = vsel %vm406_vm4, %v951_v41, 0.0 }
 0x32b   :  { %546 = vadd.xlane.f32.xlu1 %v545_v46 }
 0x33c   :  { %554 = vrot.lane.b32.xlu1 %v481_v62, %s962_s8 }
 0x33d   :  { %431 = vrot.lane.b32.xlu0 %v1135_v52, %s962_s8 }
 0x3a8   :  { %v421_v47 = vpop.xlane.xlu0 %420 }
 0x3a9   :  { %952 = vrcp.f32 %v421_v47 }
 0x3ac   :  { %v424_v48 = vpop.xlane.xlu1 %423 }
 0x3ad   :  { %954 = vrcp.f32 %v424_v48 }
 0x3b0   :  { %v544_v49 = vpop.xlane.xlu0 %543 }
 0x3b1   :  { %956 = vrcp.f32 %v544_v49 }
 0x3b4   :  { %v432_v50 = vpop.permute.xlu0 %431  ;;  %v547_v51 = vpop.xlane.xlu1 %546 }
 0x3b5   :  { %v438_v53 = vsel %vm436_vm5, %v432_v50, 0  ;;  %958 = vrcp.f32 %v547_v51  ;;  %v782_v51 = vmul.f32 0.0, %v1077_v9 }
 0x3b6   :  { %892 = vmatpush3.bf16.msra.mxu1 %v438_v53  ;;  %v953_v54 = vpop.eup %952 }
 0x3b7   :  { %903 = vmatprep.subr.bf16.mxu1 %v960_v0  ;;  %v427_v56 = vmul.f32 %v953_v54, %v945_v35 }
 0x3b8   :  { %v555_v58 = vpop.permute.xlu1 %554 }
 0x3b9   :  { %v560_v59 = vsel %vm436_vm5, %v555_v58, 0 }
 0x3ba   :  { %v955_v55 = vpop.eup %954 }
 0x3bb   :  { %v428_v57 = vmul.f32 %v955_v55, %v947_v37 }
 0x3bd   :  { %v429_v52 = vpack.c.bf16 %v428_v57, %v427_v56  ;;  %v780_v57 = vmul.f32 0.0, %v1067_v7 }
 0x3be   :  { %v957_v60 = vpop.eup %956 }
 0x3bf   :  { %894 = vmatmul.mubr.msk.bf16.vlgmr.msra.gmra.mxu1 %vm406_vm4, %v429_v52  ;;  %v550_v62 = vmul.f32 %v957_v60, %v949_v39 }
 0x3c0   :  { %904 = vmatpush3.bf16.msra.mxu1 %v560_v59  ;;  %905 = vmatprep.mubr.msk.bf16.mxu1 %vm961_vm0, %v960_v0 }
 0x3c1   :  { %917 = vmatprep.subr.bf16.mxu1 %v938_v17 }
 0x3c2   :  { %v959_v61 = vpop.eup %958 }
 0x3c3   :  { %v551_v63 = vmul.f32 %v959_v61, %v951_v41  ;;  %v779_v41 = vmul.f32 0.0, %v1061_v5 }
 0x3c5   :  { %v552_v1 = vpack.c.bf16 %v551_v63, %v550_v62 }
 0x3c7   :  { %906 = vmatmul.mubr.msk.bf16.vlgmr.msra.gmra.mxu1 %vm406_vm4, %v552_v1 }
 0x3c8   :  { %918 = vmatpush3.bf16.msra.mxu1 %v938_v17 }
 0x3c9   :  { %919 = vmatprep.subr.bf16.mxu1 %v939_v18 }
 0x3cc   :  { %920 = vmatpush3.bf16.msra.mxu1 %v939_v18 }
 0x47f   :  { %v474_v4 = vpop.f32.mrf.mxu1 }
 0x481   :  { %v895_v0 = vpop.f32.mrf.mxu1 }
 0x483   :  { %v477_v6 = vpop.f32.mrf.mxu1 }
 0x484   :  { %v603_v10 = vpack.c.bf16 %v477_v6, %v474_v4 }
 0x485   :  { %v896_v11 = vpop.f32.mrf.mxu1 }
 0x486   :  { %913 = vmatprep.mubr.msk.bf16.mxu0 %vm144_vm3, %v603_v10 }
 0x487   :  { %v596_v12 = vpop.f32.mrf.mxu1 }
 0x489   :  { %v907_v13 = vpop.f32.mrf.mxu1 }
 0x48b   :  { %v599_v14 = vpop.f32.mrf.mxu1 }
 0x48c   :  { %v604_v15 = vpack.c.bf16 %v599_v14, %v596_v12 }
 0x48d   :  { %v908_v16 = vpop.f32.mrf.mxu1 }
 0x48e   :  { %914 = vmatmul.mubr.msk.bf16.vlgmr.msra.gmra.mxu0 %vm144_vm3, %v604_v15 }
 0x54e   :  { %v915_v19 = vpop.f32.mrf.mxu0 }
 0x54f   :  { %v677_v25 = vadd.f32 %v915_v19, %v816_v21 }
 0x550   :  { %v668_v20 = vpop.f32.mrf.mxu0 }
 0x551   :  { %v669_v23 = vadd.f32 %v816_v21, %v668_v20  ;;  %v685_v31 = vadd.f32 %v677_v25, %v1116_v42  ;;  %v781_v42 = vmul.f32 0.0, %v1072_v8 }
 0x552   :  { %v916_v22 = vpop.f32.mrf.mxu0 }
 0x553   :  { %v680_v24 = vadd.f32 %v916_v22, %v816_v21  ;;  %v683_v29 = vadd.f32 %v669_v23, %v1118_v43 }
 0x554   :  { %v671_v26 = vpop.f32.mrf.mxu0 }
 0x555   :  { %v672_v27 = vadd.f32 %v816_v21, %v671_v26  ;;  %v686_v28 = vadd.f32 %v680_v24, %v1120_v44 }
 0x557   :  { %v684_v30 = vadd.f32 %v672_v27, %v1122_v45  ;;  %v688_v33 = vpack.c.bf16 %v686_v28, %v685_v31 }
 0x559   :  { %v687_v32 = vpack.c.bf16 %v684_v30, %v683_v29 }
 0x55b   :  { %921 = vmatprep.mubr.msk.bf16.mxu1 %vm144_vm3, %v687_v32 }
 0x55c   :  { %922 = vmatmul.mubr.msk.bf16.vlgmr.msra.gmra.mxu1 %vm144_vm3, %v688_v33 }
 0x61c   :  { %v923_v35 = vpop.f32.mrf.mxu1 }
 0x61d   :  { %v761_v36 = vadd.f32 %v923_v35, %v821_v34 }
 0x61e   :  { %v752_v37 = vpop.f32.mrf.mxu1 }
 0x61f   :  { %v769_v44 = vmul.f32 0.99766725, %v761_v36  ;;  %v753_v38 = vadd.f32 %v821_v34, %v752_v37 }
 0x620   :  { %v924_v43 = vpop.f32.mrf.mxu1 }
 0x621   :  { %v773_v45 = vsub.f32 %v1072_v8, %v769_v44  ;;  %v767_v39 = vmul.f32 0.99766725, %v753_v38  ;;  %v764_v40 = vadd.f32 %v924_v43, %v821_v34 }
 0x622   :  { %v755_v46 = vpop.f32.mrf.mxu1 }
 0x623   :  { %v777_v47 = vmul.f32 14.648813, %v773_v45  ;;  %v771_v48 = vsub.f32 %v1061_v5, %v767_v39  ;;  %v770_v49 = vmul.f32 0.99766725, %v764_v40  ;;  %v756_v50 = vadd.f32 %v821_v34, %v755_v46 }
 0x625   :  { %v785_v53 = vadd.f32 %v781_v42, %v777_v47  ;;  %v775_v54 = vmul.f32 14.648813, %v771_v48  ;;  %v774_v55 = vsub.f32 %v1077_v9, %v770_v49  ;;  %v768_v56 = vmul.f32 0.99766725, %v756_v50 }
 0x627   :  { %789 = vst.msk [vmem:[%s1227_s15 + $0x10] sm:$0xff] %vm65_vm2, %v785_v53  ;;  %v783_v8 = vadd.f32 %v779_v41, %v775_v54  ;;  %v778_v58 = vmul.f32 14.648813, %v774_v55  ;;  %v772_v5 = vsub.f32 %v1067_v7, %v768_v56 }
 0x629   :  { %787 = vst.msk [vmem:[%s1227_s15] sm:$0xff] %vm65_vm2, %v783_v8  ;;  %v786_v52 = vadd.f32 %v782_v51, %v778_v58  ;;  %v776_v59 = vmul.f32 14.648813, %v772_v5 }
 0x62b   :  { %790 = vst.msk [vmem:[%s1227_s15 + $0x18] sm:$0xff] %vm65_vm2, %v786_v52  ;;  %v784_v9 = vadd.f32 %v780_v57, %v776_v59 }
 0x62d   :  { %788 = vst.msk [vmem:[%s1227_s15 + $0x8] sm:$0xff] %vm65_vm2, %v784_v9 }

</bundles_post_ra>
